<compile_context>
chip_gen: v6e
topology: v6e:2x2x1
jax: 0.10.0
libtpu: 0.0.40
codegen_flags: <defaults>
</compile_context>

<pallas_src>
import functools

import numpy as np
import jax
import jax.numpy as jnp
from jax.experimental import pallas as pl
from jax.experimental.pallas import tpu as pltpu

SLOPE = 0.02  # LeakyReLU negative slope


def leaky_relu(x):
    # For slope < 1, max(x, slope*x) == LeakyReLU(slope); single VALU op.
    return jnp.maximum(x, SLOPE * x)


# ----------------------------------------------------------------------------------
# Parameter setup (glue, plain numpy/JAX): fold Conv1d into dense matmul matrices.
# ----------------------------------------------------------------------------------
def conv1d_to_dense(w, b, lin, stride, pad):
    """Conv1d(w:(Cout,Cin,K), b:(Cout,)) on length `lin` -> dense matmul.

    y_flat = x_flat @ M.T + bias, x flattened row-major over (Cin, Lin),
    y flattened row-major over (Cout, Lout).
    Returns (M.T : (Cin*Lin, Cout*Lout), bias : (1, Cout*Lout), Lout).
    """
    w = np.asarray(w, dtype=np.float32)
    b = np.asarray(b, dtype=np.float32)
    cout, cin, k = w.shape
    lout = (lin + 2 * pad - k) // stride + 1
    M = np.zeros((cout * lout, cin * lin), dtype=np.float32)
    for l in range(lout):
        for j in range(k):
            i = l * stride - pad + j
            if 0 <= i < lin:
                M[l::lout, i::lin] = w[:, :, j]
    bias = np.repeat(b, lout)
    return jnp.asarray(M.T), jnp.asarray(bias[None, :]), lout


def linear_to_dense(w, b):
    w = np.asarray(w, dtype=np.float32)
    b = np.asarray(b, dtype=np.float32)
    return jnp.asarray(w.T), jnp.asarray(b[None, :])


def init_conv(key, cout, cin, k):
    kw, kb = jax.random.split(key)
    bound = 1.0 / np.sqrt(cin * k)
    w = jax.random.uniform(kw, (cout, cin, k), jnp.float32, -bound, bound)
    b = jax.random.uniform(kb, (cout,), jnp.float32, -bound, bound)
    return w, b


def init_linear(key, out_dim, in_dim):
    kw, kb = jax.random.split(key)
    bound = 1.0 / np.sqrt(in_dim)
    w = jax.random.uniform(kw, (out_dim, in_dim), jnp.float32, -bound, bound)
    b = jax.random.uniform(kb, (out_dim,), jnp.float32, -bound, bound)
    return w, b


def build_params(T, input_dim=29, win_len=16):
    keys = jax.random.split(jax.random.PRNGKey(0), 12)
    ki = 0

    # per-window tower: convs (29->32->32->64->64, L 16->8->4->2->1) + 3x Linear(64,64)
    tower = []
    lin = win_len
    for cin, cout, k, s, p in [(input_dim, 32, 3, 2, 1), (32, 32, 3, 2, 1),
                               (32, 64, 3, 2, 1), (64, 64, 3, 2, 1)]:
        w, b = init_conv(keys[ki], cout, cin, k); ki += 1
        M, bv, lin = conv1d_to_dense(w, b, lin, s, p)
        tower += [M, bv]
    assert lin == 1
    for _ in range(3):
        w, b = init_linear(keys[ki], 64, 64); ki += 1
        M, bv = linear_to_dense(w, b)
        tower += [M, bv]

    # temporal filter: convs over (channels=T, length 64->32->8->2->1) + Linear(T,T)
    filt = []
    lin = 64
    for cin, cout, k, s, p in [(T, T, 3, 2, 1), (T, T, 5, 4, 2),
                               (T, T, 5, 4, 2), (T, T, 2, 1, 0)]:
        w, b = init_conv(keys[ki], cout, cin, k); ki += 1
        M, bv, lin = conv1d_to_dense(w, b, lin, s, p)
        filt += [M, bv]
    assert lin == 1
    w, b = init_linear(keys[ki], T, T); ki += 1
    M, bv = linear_to_dense(w, b)
    filt += [M, bv]
    return tower, filt


def prepare_kernel_params(tower, filt, pad_k):
    """bf16 weights (f32 biases); zero-pad first layer's contraction dim to pad_k."""
    tower = list(tower)
    if pad_k > tower[0].shape[0]:
        tower[0] = jnp.pad(tower[0], ((0, pad_k - tower[0].shape[0]), (0, 0)))

    def convert(plist):
        return [p.astype(jnp.bfloat16) if i % 2 == 0 else p.astype(jnp.float32)
                for i, p in enumerate(plist)]

    return convert(tower), convert(list(filt))


# ----------------------------------------------------------------------------------
# Fused Pallas kernel: tower over all T*Bc windows + temporal filter + weighted sum.
# ----------------------------------------------------------------------------------
def _fused_kernel(T, Bc, x_ref, *refs):
    tower = refs[:14]
    if T > 1:
        filt = refs[14:24]
        y_ref = refs[24]
        zf_ref = refs[25]
    else:
        filt = ()
        y_ref = refs[14]

    def layer(h, w_ref, b_ref):
        return leaky_relu(jnp.dot(h, w_ref[...], preferred_element_type=jnp.float32)
                          + b_ref[...])

    # ---- per-window tower: all T*Bc windows batched on the MXU row axis ----
    h = x_ref[...]                                            # (T*Bc, Kpad) bf16
    for i in range(0, 12, 2):
        h = layer(h, tower[i], tower[i + 1]).astype(jnp.bfloat16)
    z = jnp.dot(h, tower[12][...], preferred_element_type=jnp.float32) + tower[13][...]
    # z: (T*Bc, 64) f32, rows ordered t*Bc + b

    if T == 1:
        y_ref[...] = z.astype(y_ref.dtype)                    # matches PyTorch z[:, 0]
        return

    # ---- assemble zflat[b, t*64 + d] = z[t*Bc + b, d] with T independent stores ----
    for t in range(T):
        zf_ref[:, t * 64:(t + 1) * 64] = z[t * Bc:(t + 1) * Bc, :]
    zflat = zf_ref[...]                                       # (Bc, T*64) f32

    # ---- temporal filter: plain matmul chain (f32 activations, bf16 weights) ----
    f1, c1, f2, c2, f3, c3, f4, c4, wl, cl = filt
    h = leaky_relu(jnp.dot(zflat, f1[...], preferred_element_type=jnp.float32) + c1[...])
    h = leaky_relu(jnp.dot(h, f2[...], preferred_element_type=jnp.float32) + c2[...])
    h = leaky_relu(jnp.dot(h, f3[...], preferred_element_type=jnp.float32) + c3[...])
    h = leaky_relu(jnp.dot(h, f4[...], preferred_element_type=jnp.float32) + c4[...])
    f = jax.nn.sigmoid(jnp.dot(h, wl[...], preferred_element_type=jnp.float32) + cl[...])
    # f: (Bc, T) f32

    # ---- f-weighted window sum as two matmuls (no slices / lane broadcasts / tree) ----
    TE = T * 64
    # E[t, j] = 1 iff j // 64 == t   ->   fe[b, t*64 + d] = f[b, t]
    e_row = jax.lax.broadcasted_iota(jnp.int32, (T, TE), 0)
    e_col = jax.lax.broadcasted_iota(jnp.int32, (T, TE), 1)
    E = jnp.where(jnp.right_shift(e_col, 6) == e_row, 1.0, 0.0).astype(jnp.float32)
    fe = jnp.dot(f, E, preferred_element_type=jnp.float32)    # (Bc, T*64)
    # S[j, d] = 1 iff j % 64 == d    ->   y[b, d] = sum_t f[b,t] * zflat[b, t*64 + d]
    s_row = jax.lax.broadcasted_iota(jnp.int32, (TE, 64), 0)
    s_col = jax.lax.broadcasted_iota(jnp.int32, (TE, 64), 1)
    S = jnp.where(jnp.bitwise_and(s_row, 63) == s_col, 1.0, 0.0).astype(jnp.float32)
    y = jnp.dot(fe * zflat, S, preferred_element_type=jnp.float32)   # (Bc, 64) f32
    y_ref[...] = y.astype(y_ref.dtype)


# ----------------------------------------------------------------------------------
# Wrapper
# ----------------------------------------------------------------------------------
def audio2expression_forward(audio, tower_params, filt_params, T,
                             max_clips_per_chunk=128):
    B = audio.shape[0]
    W, C = audio.shape[2], audio.shape[3]
    K = tower_params[0].shape[0]                       # padded contraction dim (512)

    # Chunking over clips: one chunk for small B; otherwise tile-aligned chunks marked
    # "parallel" (split across the two TensorCores on v7x).  Weights are DMA'd once and
    # stay VMEM-resident across chunks (constant-index BlockSpecs).
    if B <= max_clips_per_chunk:
        n_chunks, Bc = 1, B
    else:
        Bc = max_clips_per_chunk                       # multiple of 8 -> aligned blocks
        n_chunks = pl.cdiv(B, Bc)
    B_pad = n_chunks * Bc

    a = jnp.pad(audio, ((0, B_pad - B), (0, 0), (0, 0), (0, 0))) if B_pad != B else audio

    # Rows ordered (chunk, t, b_local): each grid step sees one contiguous (T*Bc, K)
    # slab in the t-major order the temporal filter expects; columns are the (C, W)
    # row-major window flattening the folded conv matrices use, zero-padded 464 -> 512.
    x = jnp.transpose(a.reshape(n_chunks, Bc, T, W, C), (0, 2, 1, 4, 3))
    x = x.reshape(n_chunks * T * Bc, C * W)
    x = jnp.pad(x, ((0, 0), (0, K - C * W))).astype(jnp.bfloat16)

    params = list(tower_params) + (list(filt_params) if T > 1 else [])

    # Advisory cost estimate.
    rows = B_pad * T
    flops = sum(2 * rows * w.shape[0] * w.shape[1] for w in tower_params[0::2])
    if T > 1:
        flops += sum(2 * B_pad * w.shape[0] * w.shape[1] for w in filt_params[0::2])
        flops += 2 * B_pad * T * (T * 64) + 2 * B_pad * (T * 64) * 64
    bytes_accessed = int(x.size) * x.dtype.itemsize + B_pad * 64 * 4
    bytes_accessed += sum(int(p.size) * p.dtype.itemsize for p in params)
    cost = pl.CostEstimate(flops=int(flops),
                           transcendentals=int(B_pad * T) if T > 1 else 0,
                           bytes_accessed=int(bytes_accessed))

    def _resident(p):   # full array, constant block index -> fetched once, stays in VMEM
        return pl.BlockSpec(p.shape, lambda i: (0, 0))

    in_specs = [pl.BlockSpec((T * Bc, K), lambda i: (i, 0))]
    in_specs += [_resident(p) for p in params]
    out_specs = pl.BlockSpec((Bc, 64), lambda i: (i, 0))
    scratch = [pltpu.VMEM((Bc, T * 64), jnp.float32)] if T > 1 else []

    y = pl.pallas_call(
        functools.partial(_fused_kernel, T, Bc),
        grid=(n_chunks,),
        out_shape=jax.ShapeDtypeStruct((B_pad, 64), jnp.float32),
        in_specs=in_specs,
        out_specs=out_specs,
        scratch_shapes=scratch,
        compiler_params=pltpu.CompilerParams(dimension_semantics=("parallel",)),
        cost_estimate=cost,
    )(x, *params)
    return y[:B]


# ----------------------------------------------------------------------------------
# Pure-JAX reference (same dense parameterization, f32 activations) for validation
# ----------------------------------------------------------------------------------
def reference_forward(audio, tower_k, filt_k, T):
    tower = [p.astype(jnp.float32) for p in tower_k]
    filt = [p.astype(jnp.float32) for p in filt_k]
    B = audio.shape[0]
    W, C = audio.shape[2], audio.shape[3]
    K = tower[0].shape[0]
    x = jnp.transpose(audio, (1, 0, 3, 2)).reshape(T * B, C * W).astype(jnp.float32)
    x = jnp.pad(x, ((0, 0), (0, K - C * W)))
    h = x
    for i in range(0, 12, 2):
        h = leaky_relu(h @ tower[i] + tower[i + 1])
    z = (h @ tower[12] + tower[13]).reshape(T, B, 64)
    if T == 1:
        return z[0]
    f1, c1, f2, c2, f3, c3, f4, c4, wl, cl = filt
    zflat = jnp.transpose(z, (1, 0, 2)).reshape(B, T * 64)
    h = leaky_relu(zflat @ f1 + c1)
    h = leaky_relu(h @ f2 + c2)
    h = leaky_relu(h @ f3 + c3)
    h = leaky_relu(h @ f4 + c4)
    f = jax.nn.sigmoid(h @ wl + cl)
    return jnp.einsum("tbd,bt->bd", z, f)


if __name__ == "__main__":
    B, T, W, C = 2, 8, 16, 29  # the forward implies window length 16 and 29 input features
    tower_f32, filt_f32 = build_params(T, input_dim=C, win_len=W)
    pad_k = ((C * W + 127) // 128) * 128  # 464 -> 512
    tower_k, filt_k = prepare_kernel_params(tower_f32, filt_f32, pad_k)

    audio = jax.random.normal(jax.random.PRNGKey(0), (B, T, W, C), dtype=jnp.float32)

    fwd = jax.jit(functools.partial(audio2expression_forward, T=T))
    y = jax.block_until_ready(fwd(audio, tower_k, filt_k))

    y_ref = reference_forward(audio, tower_k, filt_k, T)
    np.testing.assert_allclose(np.asarray(y), np.asarray(y_ref), rtol=5e-2, atol=5e-3)
    print("KERNEL_OK")
</pallas_src>

<mosaic_0001>
module attributes {stable_mosaic.version = 11 : i64} {
  func.func @_fused_kernel(%arg0: i32, %arg1: memref<16x512xbf16, #tpu.memory_space<vmem>>, %arg2: memref<512x256xbf16, #tpu.memory_space<vmem>>, %arg3: memref<1x256xf32, #tpu.memory_space<vmem>>, %arg4: memref<256x128xbf16, #tpu.memory_space<vmem>>, %arg5: memref<1x128xf32, #tpu.memory_space<vmem>>, %arg6: memref<128x128xbf16, #tpu.memory_space<vmem>>, %arg7: memref<1x128xf32, #tpu.memory_space<vmem>>, %arg8: memref<128x64xbf16, #tpu.memory_space<vmem>>, %arg9: memref<1x64xf32, #tpu.memory_space<vmem>>, %arg10: memref<64x64xbf16, #tpu.memory_space<vmem>>, %arg11: memref<1x64xf32, #tpu.memory_space<vmem>>, %arg12: memref<64x64xbf16, #tpu.memory_space<vmem>>, %arg13: memref<1x64xf32, #tpu.memory_space<vmem>>, %arg14: memref<64x64xbf16, #tpu.memory_space<vmem>>, %arg15: memref<1x64xf32, #tpu.memory_space<vmem>>, %arg16: memref<512x256xbf16, #tpu.memory_space<vmem>>, %arg17: memref<1x256xf32, #tpu.memory_space<vmem>>, %arg18: memref<256x64xbf16, #tpu.memory_space<vmem>>, %arg19: memref<1x64xf32, #tpu.memory_space<vmem>>, %arg20: memref<64x16xbf16, #tpu.memory_space<vmem>>, %arg21: memref<1x16xf32, #tpu.memory_space<vmem>>, %arg22: memref<16x8xbf16, #tpu.memory_space<vmem>>, %arg23: memref<1x8xf32, #tpu.memory_space<vmem>>, %arg24: memref<8x8xbf16, #tpu.memory_space<vmem>>, %arg25: memref<1x8xf32, #tpu.memory_space<vmem>>, %arg26: memref<2x64xf32, #tpu.memory_space<vmem>>, %arg27: memref<2x512xf32, #tpu.memory_space<vmem>>) attributes {dimension_semantics = [#tpu.dimension_semantics<parallel>], iteration_bounds = array<i64: 1>, scalar_prefetch = 0 : i64, scratch_operands = 1 : i64, tpu.core_type = #tpu.core_type<tc>, window_params = [{transform_indices = @transform_0, window_bounds = array<i64: 16, 512>}, {pipeline_mode = #tpu.pipeline_mode<synchronous>, transform_indices = @transform_1, window_bounds = array<i64: 512, 256>}, {pipeline_mode = #tpu.pipeline_mode<synchronous>, transform_indices = @transform_2, window_bounds = array<i64: 1, 256>}, {pipeline_mode = #tpu.pipeline_mode<synchronous>, transform_indices = @transform_3, window_bounds = array<i64: 256, 128>}, {pipeline_mode = #tpu.pipeline_mode<synchronous>, transform_indices = @transform_4, window_bounds = array<i64: 1, 128>}, {pipeline_mode = #tpu.pipeline_mode<synchronous>, transform_indices = @transform_5, window_bounds = array<i64: 128, 128>}, {pipeline_mode = #tpu.pipeline_mode<synchronous>, transform_indices = @transform_6, window_bounds = array<i64: 1, 128>}, {pipeline_mode = #tpu.pipeline_mode<synchronous>, transform_indices = @transform_7, window_bounds = array<i64: 128, 64>}, {pipeline_mode = #tpu.pipeline_mode<synchronous>, transform_indices = @transform_8, window_bounds = array<i64: 1, 64>}, {pipeline_mode = #tpu.pipeline_mode<synchronous>, transform_indices = @transform_9, window_bounds = array<i64: 64, 64>}, {pipeline_mode = #tpu.pipeline_mode<synchronous>, transform_indices = @transform_10, window_bounds = array<i64: 1, 64>}, {pipeline_mode = #tpu.pipeline_mode<synchronous>, transform_indices = @transform_11, window_bounds = array<i64: 64, 64>}, {pipeline_mode = #tpu.pipeline_mode<synchronous>, transform_indices = @transform_12, window_bounds = array<i64: 1, 64>}, {pipeline_mode = #tpu.pipeline_mode<synchronous>, transform_indices = @transform_13, window_bounds = array<i64: 64, 64>}, {pipeline_mode = #tpu.pipeline_mode<synchronous>, transform_indices = @transform_14, window_bounds = array<i64: 1, 64>}, {pipeline_mode = #tpu.pipeline_mode<synchronous>, transform_indices = @transform_15, window_bounds = array<i64: 512, 256>}, {pipeline_mode = #tpu.pipeline_mode<synchronous>, transform_indices = @transform_16, window_bounds = array<i64: 1, 256>}, {pipeline_mode = #tpu.pipeline_mode<synchronous>, transform_indices = @transform_17, window_bounds = array<i64: 256, 64>}, {pipeline_mode = #tpu.pipeline_mode<synchronous>, transform_indices = @transform_18, window_bounds = array<i64: 1, 64>}, {pipeline_mode = #tpu.pipeline_mode<synchronous>, transform_indices = @transform_19, window_bounds = array<i64: 64, 16>}, {pipeline_mode = #tpu.pipeline_mode<synchronous>, transform_indices = @transform_20, window_bounds = array<i64: 1, 16>}, {pipeline_mode = #tpu.pipeline_mode<synchronous>, transform_indices = @transform_21, window_bounds = array<i64: 16, 8>}, {pipeline_mode = #tpu.pipeline_mode<synchronous>, transform_indices = @transform_22, window_bounds = array<i64: 1, 8>}, {pipeline_mode = #tpu.pipeline_mode<synchronous>, transform_indices = @transform_23, window_bounds = array<i64: 8, 8>}, {pipeline_mode = #tpu.pipeline_mode<synchronous>, transform_indices = @transform_24, window_bounds = array<i64: 1, 8>}, {transform_indices = @transform_25, window_bounds = array<i64: 2, 64>}]} {
    %c0 = arith.constant 0 : index
    %c0_0 = arith.constant 0 : index
    %0 = vector.load %arg1[%c0, %c0_0] : memref<16x512xbf16, #tpu.memory_space<vmem>>, vector<16x512xbf16>
    %c0_1 = arith.constant 0 : index
    %c0_2 = arith.constant 0 : index
    %1 = vector.load %arg2[%c0_1, %c0_2] : memref<512x256xbf16, #tpu.memory_space<vmem>>, vector<512x256xbf16>
    %cst = arith.constant dense<0.000000e+00> : vector<16x256xf32>
    %2 = tpu.matmul %0, %1, %cst {dimension_numbers = #tpu.dot_dimension_numbers<[1], [0], [0], [1], [0, 0, 1, 1], [], []>} : vector<16x512xbf16>, vector<512x256xbf16>, vector<16x256xf32> -> vector<16x256xf32>
    %c0_3 = arith.constant 0 : index
    %c0_4 = arith.constant 0 : index
    %3 = vector.load %arg3[%c0_3, %c0_4] : memref<1x256xf32, #tpu.memory_space<vmem>>, vector<1x256xf32>
    %4 = vector.broadcast %3 : vector<1x256xf32> to vector<16x256xf32>
    %5 = arith.addf %2, %4 : vector<16x256xf32>
    %cst_5 = arith.constant 2.000000e-02 : f32
    %6 = vector.broadcast %cst_5 : f32 to vector<16x256xf32>
    %7 = arith.mulf %6, %5 : vector<16x256xf32>
    %8 = arith.maximumf %5, %7 : vector<16x256xf32>
    %9 = arith.truncf %8 : vector<16x256xf32> to vector<16x256xbf16>
    %c0_6 = arith.constant 0 : index
    %c0_7 = arith.constant 0 : index
    %10 = vector.load %arg4[%c0_6, %c0_7] : memref<256x128xbf16, #tpu.memory_space<vmem>>, vector<256x128xbf16>
    %cst_8 = arith.constant dense<0.000000e+00> : vector<16x128xf32>
    %11 = tpu.matmul %9, %10, %cst_8 {dimension_numbers = #tpu.dot_dimension_numbers<[1], [0], [0], [1], [0, 0, 1, 1], [], []>} : vector<16x256xbf16>, vector<256x128xbf16>, vector<16x128xf32> -> vector<16x128xf32>
    %c0_9 = arith.constant 0 : index
    %c0_10 = arith.constant 0 : index
    %12 = vector.load %arg5[%c0_9, %c0_10] : memref<1x128xf32, #tpu.memory_space<vmem>>, vector<1x128xf32>
    %13 = vector.broadcast %12 : vector<1x128xf32> to vector<16x128xf32>
    %14 = arith.addf %11, %13 : vector<16x128xf32>
    %cst_11 = arith.constant 2.000000e-02 : f32
    %15 = vector.broadcast %cst_11 : f32 to vector<16x128xf32>
    %16 = arith.mulf %15, %14 : vector<16x128xf32>
    %17 = arith.maximumf %14, %16 : vector<16x128xf32>
    %18 = arith.truncf %17 : vector<16x128xf32> to vector<16x128xbf16>
    %c0_12 = arith.constant 0 : index
    %c0_13 = arith.constant 0 : index
    %19 = vector.load %arg6[%c0_12, %c0_13] : memref<128x128xbf16, #tpu.memory_space<vmem>>, vector<128x128xbf16>
    %cst_14 = arith.constant dense<0.000000e+00> : vector<16x128xf32>
    %20 = tpu.matmul %18, %19, %cst_14 {dimension_numbers = #tpu.dot_dimension_numbers<[1], [0], [0], [1], [0, 0, 1, 1], [], []>} : vector<16x128xbf16>, vector<128x128xbf16>, vector<16x128xf32> -> vector<16x128xf32>
    %c0_15 = arith.constant 0 : index
    %c0_16 = arith.constant 0 : index
    %21 = vector.load %arg7[%c0_15, %c0_16] : memref<1x128xf32, #tpu.memory_space<vmem>>, vector<1x128xf32>
    %22 = vector.broadcast %21 : vector<1x128xf32> to vector<16x128xf32>
    %23 = arith.addf %20, %22 : vector<16x128xf32>
    %cst_17 = arith.constant 2.000000e-02 : f32
    %24 = vector.broadcast %cst_17 : f32 to vector<16x128xf32>
    %25 = arith.mulf %24, %23 : vector<16x128xf32>
    %26 = arith.maximumf %23, %25 : vector<16x128xf32>
    %27 = arith.truncf %26 : vector<16x128xf32> to vector<16x128xbf16>
    %c0_18 = arith.constant 0 : index
    %c0_19 = arith.constant 0 : index
    %28 = vector.load %arg8[%c0_18, %c0_19] : memref<128x64xbf16, #tpu.memory_space<vmem>>, vector<128x64xbf16>
    %cst_20 = arith.constant dense<0.000000e+00> : vector<16x64xf32>
    %29 = tpu.matmul %27, %28, %cst_20 {dimension_numbers = #tpu.dot_dimension_numbers<[1], [0], [0], [1], [0, 0, 1, 1], [], []>} : vector<16x128xbf16>, vector<128x64xbf16>, vector<16x64xf32> -> vector<16x64xf32>
    %c0_21 = arith.constant 0 : index
    %c0_22 = arith.constant 0 : index
    %30 = vector.load %arg9[%c0_21, %c0_22] : memref<1x64xf32, #tpu.memory_space<vmem>>, vector<1x64xf32>
    %31 = vector.broadcast %30 : vector<1x64xf32> to vector<16x64xf32>
    %32 = arith.addf %29, %31 : vector<16x64xf32>
    %cst_23 = arith.constant 2.000000e-02 : f32
    %33 = vector.broadcast %cst_23 : f32 to vector<16x64xf32>
    %34 = arith.mulf %33, %32 : vector<16x64xf32>
    %35 = arith.maximumf %32, %34 : vector<16x64xf32>
    %36 = arith.truncf %35 : vector<16x64xf32> to vector<16x64xbf16>
    %c0_24 = arith.constant 0 : index
    %c0_25 = arith.constant 0 : index
    %37 = vector.load %arg10[%c0_24, %c0_25] : memref<64x64xbf16, #tpu.memory_space<vmem>>, vector<64x64xbf16>
    %cst_26 = arith.constant dense<0.000000e+00> : vector<16x64xf32>
    %38 = tpu.matmul %36, %37, %cst_26 {dimension_numbers = #tpu.dot_dimension_numbers<[1], [0], [0], [1], [0, 0, 1, 1], [], []>} : vector<16x64xbf16>, vector<64x64xbf16>, vector<16x64xf32> -> vector<16x64xf32>
    %c0_27 = arith.constant 0 : index
    %c0_28 = arith.constant 0 : index
    %39 = vector.load %arg11[%c0_27, %c0_28] : memref<1x64xf32, #tpu.memory_space<vmem>>, vector<1x64xf32>
    %40 = vector.broadcast %39 : vector<1x64xf32> to vector<16x64xf32>
    %41 = arith.addf %38, %40 : vector<16x64xf32>
    %cst_29 = arith.constant 2.000000e-02 : f32
    %42 = vector.broadcast %cst_29 : f32 to vector<16x64xf32>
    %43 = arith.mulf %42, %41 : vector<16x64xf32>
    %44 = arith.maximumf %41, %43 : vector<16x64xf32>
    %45 = arith.truncf %44 : vector<16x64xf32> to vector<16x64xbf16>
    %c0_30 = arith.constant 0 : index
    %c0_31 = arith.constant 0 : index
    %46 = vector.load %arg12[%c0_30, %c0_31] : memref<64x64xbf16, #tpu.memory_space<vmem>>, vector<64x64xbf16>
    %cst_32 = arith.constant dense<0.000000e+00> : vector<16x64xf32>
    %47 = tpu.matmul %45, %46, %cst_32 {dimension_numbers = #tpu.dot_dimension_numbers<[1], [0], [0], [1], [0, 0, 1, 1], [], []>} : vector<16x64xbf16>, vector<64x64xbf16>, vector<16x64xf32> -> vector<16x64xf32>
    %c0_33 = arith.constant 0 : index
    %c0_34 = arith.constant 0 : index
    %48 = vector.load %arg13[%c0_33, %c0_34] : memref<1x64xf32, #tpu.memory_space<vmem>>, vector<1x64xf32>
    %49 = vector.broadcast %48 : vector<1x64xf32> to vector<16x64xf32>
    %50 = arith.addf %47, %49 : vector<16x64xf32>
    %cst_35 = arith.constant 2.000000e-02 : f32
    %51 = vector.broadcast %cst_35 : f32 to vector<16x64xf32>
    %52 = arith.mulf %51, %50 : vector<16x64xf32>
    %53 = arith.maximumf %50, %52 : vector<16x64xf32>
    %54 = arith.truncf %53 : vector<16x64xf32> to vector<16x64xbf16>
    %c0_36 = arith.constant 0 : index
    %c0_37 = arith.constant 0 : index
    %55 = vector.load %arg14[%c0_36, %c0_37] : memref<64x64xbf16, #tpu.memory_space<vmem>>, vector<64x64xbf16>
    %cst_38 = arith.constant dense<0.000000e+00> : vector<16x64xf32>
    %56 = tpu.matmul %54, %55, %cst_38 {dimension_numbers = #tpu.dot_dimension_numbers<[1], [0], [0], [1], [0, 0, 1, 1], [], []>} : vector<16x64xbf16>, vector<64x64xbf16>, vector<16x64xf32> -> vector<16x64xf32>
    %c0_39 = arith.constant 0 : index
    %c0_40 = arith.constant 0 : index
    %57 = vector.load %arg15[%c0_39, %c0_40] : memref<1x64xf32, #tpu.memory_space<vmem>>, vector<1x64xf32>
    %58 = vector.broadcast %57 : vector<1x64xf32> to vector<16x64xf32>
    %59 = arith.addf %56, %58 : vector<16x64xf32>
    %60 = vector.extract_strided_slice %59 {offsets = [0, 0], sizes = [2, 64], strides = [1, 1]} : vector<16x64xf32> to vector<2x64xf32>
    %c0_41 = arith.constant 0 : index
    %c0_42 = arith.constant 0 : index
    %61 = vector.load %arg27[%c0_41, %c0_42] : memref<2x512xf32, #tpu.memory_space<vmem>>, vector<2x64xf32>
    tpu.vector_store %arg27[%c0_41, %c0_42], %60 {strides = array<i32>} : memref<2x512xf32, #tpu.memory_space<vmem>>, vector<2x64xf32>,
    %62 = vector.extract_strided_slice %59 {offsets = [2, 0], sizes = [2, 64], strides = [1, 1]} : vector<16x64xf32> to vector<2x64xf32>
    %c0_43 = arith.constant 0 : index
    %c64 = arith.constant 64 : index
    %63 = vector.load %arg27[%c0_43, %c64] : memref<2x512xf32, #tpu.memory_space<vmem>>, vector<2x64xf32>
    tpu.vector_store %arg27[%c0_43, %c64], %62 {strides = array<i32>} : memref<2x512xf32, #tpu.memory_space<vmem>>, vector<2x64xf32>,
    %64 = vector.extract_strided_slice %59 {offsets = [4, 0], sizes = [2, 64], strides = [1, 1]} : vector<16x64xf32> to vector<2x64xf32>
    %c0_44 = arith.constant 0 : index
    %c128 = arith.constant 128 : index
    %65 = vector.load %arg27[%c0_44, %c128] : memref<2x512xf32, #tpu.memory_space<vmem>>, vector<2x64xf32>
    tpu.vector_store %arg27[%c0_44, %c128], %64 {strides = array<i32>} : memref<2x512xf32, #tpu.memory_space<vmem>>, vector<2x64xf32>,
    %66 = vector.extract_strided_slice %59 {offsets = [6, 0], sizes = [2, 64], strides = [1, 1]} : vector<16x64xf32> to vector<2x64xf32>
    %c0_45 = arith.constant 0 : index
    %c192 = arith.constant 192 : index
    %67 = vector.load %arg27[%c0_45, %c192] : memref<2x512xf32, #tpu.memory_space<vmem>>, vector<2x64xf32>
    tpu.vector_store %arg27[%c0_45, %c192], %66 {strides = array<i32>} : memref<2x512xf32, #tpu.memory_space<vmem>>, vector<2x64xf32>,
    %68 = vector.extract_strided_slice %59 {offsets = [8, 0], sizes = [2, 64], strides = [1, 1]} : vector<16x64xf32> to vector<2x64xf32>
    %c0_46 = arith.constant 0 : index
    %c256 = arith.constant 256 : index
    %69 = vector.load %arg27[%c0_46, %c256] : memref<2x512xf32, #tpu.memory_space<vmem>>, vector<2x64xf32>
    tpu.vector_store %arg27[%c0_46, %c256], %68 {strides = array<i32>} : memref<2x512xf32, #tpu.memory_space<vmem>>, vector<2x64xf32>,
    %70 = vector.extract_strided_slice %59 {offsets = [10, 0], sizes = [2, 64], strides = [1, 1]} : vector<16x64xf32> to vector<2x64xf32>
    %c0_47 = arith.constant 0 : index
    %c320 = arith.constant 320 : index
    %71 = vector.load %arg27[%c0_47, %c320] : memref<2x512xf32, #tpu.memory_space<vmem>>, vector<2x64xf32>
    tpu.vector_store %arg27[%c0_47, %c320], %70 {strides = array<i32>} : memref<2x512xf32, #tpu.memory_space<vmem>>, vector<2x64xf32>,
    %72 = vector.extract_strided_slice %59 {offsets = [12, 0], sizes = [2, 64], strides = [1, 1]} : vector<16x64xf32> to vector<2x64xf32>
    %c0_48 = arith.constant 0 : index
    %c384 = arith.constant 384 : index
    %73 = vector.load %arg27[%c0_48, %c384] : memref<2x512xf32, #tpu.memory_space<vmem>>, vector<2x64xf32>
    tpu.vector_store %arg27[%c0_48, %c384], %72 {strides = array<i32>} : memref<2x512xf32, #tpu.memory_space<vmem>>, vector<2x64xf32>,
    %74 = vector.extract_strided_slice %59 {offsets = [14, 0], sizes = [2, 64], strides = [1, 1]} : vector<16x64xf32> to vector<2x64xf32>
    %c0_49 = arith.constant 0 : index
    %c448 = arith.constant 448 : index
    %75 = vector.load %arg27[%c0_49, %c448] : memref<2x512xf32, #tpu.memory_space<vmem>>, vector<2x64xf32>
    tpu.vector_store %arg27[%c0_49, %c448], %74 {strides = array<i32>} : memref<2x512xf32, #tpu.memory_space<vmem>>, vector<2x64xf32>,
    %c0_50 = arith.constant 0 : index
    %c0_51 = arith.constant 0 : index
    %76 = vector.load %arg27[%c0_50, %c0_51] : memref<2x512xf32, #tpu.memory_space<vmem>>, vector<2x512xf32>
    %c0_52 = arith.constant 0 : index
    %c0_53 = arith.constant 0 : index
    %77 = vector.load %arg16[%c0_52, %c0_53] : memref<512x256xbf16, #tpu.memory_space<vmem>>, vector<512x256xbf16>
    %cst_54 = arith.constant dense<0.000000e+00> : vector<2x256xf32>
    %78 = tpu.matmul %76, %77, %cst_54 {dimension_numbers = #tpu.dot_dimension_numbers<[1], [0], [0], [1], [0, 0, 1, 1], [], []>} : vector<2x512xf32>, vector<512x256xbf16>, vector<2x256xf32> -> vector<2x256xf32>
    %c0_55 = arith.constant 0 : index
    %c0_56 = arith.constant 0 : index
    %79 = vector.load %arg17[%c0_55, %c0_56] : memref<1x256xf32, #tpu.memory_space<vmem>>, vector<1x256xf32>
    %80 = vector.broadcast %79 : vector<1x256xf32> to vector<2x256xf32>
    %81 = arith.addf %78, %80 : vector<2x256xf32>
    %cst_57 = arith.constant 2.000000e-02 : f32
    %82 = vector.broadcast %cst_57 : f32 to vector<2x256xf32>
    %83 = arith.mulf %82, %81 : vector<2x256xf32>
    %84 = arith.maximumf %81, %83 : vector<2x256xf32>
    %c0_58 = arith.constant 0 : index
    %c0_59 = arith.constant 0 : index
    %85 = vector.load %arg18[%c0_58, %c0_59] : memref<256x64xbf16, #tpu.memory_space<vmem>>, vector<256x64xbf16>
    %cst_60 = arith.constant dense<0.000000e+00> : vector<2x64xf32>
    %86 = tpu.matmul %84, %85, %cst_60 {dimension_numbers = #tpu.dot_dimension_numbers<[1], [0], [0], [1], [0, 0, 1, 1], [], []>} : vector<2x256xf32>, vector<256x64xbf16>, vector<2x64xf32> -> vector<2x64xf32>
    %c0_61 = arith.constant 0 : index
    %c0_62 = arith.constant 0 : index
    %87 = vector.load %arg19[%c0_61, %c0_62] : memref<1x64xf32, #tpu.memory_space<vmem>>, vector<1x64xf32>
    %88 = vector.broadcast %87 : vector<1x64xf32> to vector<2x64xf32>
    %89 = arith.addf %86, %88 : vector<2x64xf32>
    %cst_63 = arith.constant 2.000000e-02 : f32
    %90 = vector.broadcast %cst_63 : f32 to vector<2x64xf32>
    %91 = arith.mulf %90, %89 : vector<2x64xf32>
    %92 = arith.maximumf %89, %91 : vector<2x64xf32>
    %c0_64 = arith.constant 0 : index
    %c0_65 = arith.constant 0 : index
    %93 = vector.load %arg20[%c0_64, %c0_65] : memref<64x16xbf16, #tpu.memory_space<vmem>>, vector<64x16xbf16>
    %cst_66 = arith.constant dense<0.000000e+00> : vector<2x16xf32>
    %94 = tpu.matmul %92, %93, %cst_66 {dimension_numbers = #tpu.dot_dimension_numbers<[1], [0], [0], [1], [0, 0, 1, 1], [], []>} : vector<2x64xf32>, vector<64x16xbf16>, vector<2x16xf32> -> vector<2x16xf32>
    %c0_67 = arith.constant 0 : index
    %c0_68 = arith.constant 0 : index
    %95 = vector.load %arg21[%c0_67, %c0_68] : memref<1x16xf32, #tpu.memory_space<vmem>>, vector<1x16xf32>
    %96 = vector.broadcast %95 : vector<1x16xf32> to vector<2x16xf32>
    %97 = arith.addf %94, %96 : vector<2x16xf32>
    %cst_69 = arith.constant 2.000000e-02 : f32
    %98 = vector.broadcast %cst_69 : f32 to vector<2x16xf32>
    %99 = arith.mulf %98, %97 : vector<2x16xf32>
    %100 = arith.maximumf %97, %99 : vector<2x16xf32>
    %c0_70 = arith.constant 0 : index
    %c0_71 = arith.constant 0 : index
    %101 = vector.load %arg22[%c0_70, %c0_71] : memref<16x8xbf16, #tpu.memory_space<vmem>>, vector<16x8xbf16>
    %cst_72 = arith.constant dense<0.000000e+00> : vector<2x8xf32>
    %102 = tpu.matmul %100, %101, %cst_72 {dimension_numbers = #tpu.dot_dimension_numbers<[1], [0], [0], [1], [0, 0, 1, 1], [], []>} : vector<2x16xf32>, vector<16x8xbf16>, vector<2x8xf32> -> vector<2x8xf32>
    %c0_73 = arith.constant 0 : index
    %c0_74 = arith.constant 0 : index
    %103 = vector.load %arg23[%c0_73, %c0_74] : memref<1x8xf32, #tpu.memory_space<vmem>>, vector<1x8xf32>
    %104 = vector.broadcast %103 : vector<1x8xf32> to vector<2x8xf32>
    %105 = arith.addf %102, %104 : vector<2x8xf32>
    %cst_75 = arith.constant 2.000000e-02 : f32
    %106 = vector.broadcast %cst_75 : f32 to vector<2x8xf32>
    %107 = arith.mulf %106, %105 : vector<2x8xf32>
    %108 = arith.maximumf %105, %107 : vector<2x8xf32>
    %c0_76 = arith.constant 0 : index
    %c0_77 = arith.constant 0 : index
    %109 = vector.load %arg24[%c0_76, %c0_77] : memref<8x8xbf16, #tpu.memory_space<vmem>>, vector<8x8xbf16>
    %cst_78 = arith.constant dense<0.000000e+00> : vector<2x8xf32>
    %110 = tpu.matmul %108, %109, %cst_78 {dimension_numbers = #tpu.dot_dimension_numbers<[1], [0], [0], [1], [0, 0, 1, 1], [], []>} : vector<2x8xf32>, vector<8x8xbf16>, vector<2x8xf32> -> vector<2x8xf32>
    %c0_79 = arith.constant 0 : index
    %c0_80 = arith.constant 0 : index
    %111 = vector.load %arg25[%c0_79, %c0_80] : memref<1x8xf32, #tpu.memory_space<vmem>>, vector<1x8xf32>
    %112 = vector.broadcast %111 : vector<1x8xf32> to vector<2x8xf32>
    %113 = arith.addf %110, %112 : vector<2x8xf32>
    %114 = arith.negf %113 : vector<2x8xf32>
    %115 = math.exp %114 : vector<2x8xf32>
    %cst_81 = arith.constant 1.000000e+00 : f32
    %116 = vector.broadcast %cst_81 : f32 to vector<2x8xf32>
    %117 = arith.addf %116, %115 : vector<2x8xf32>
    %118 = arith.divf %116, %117 : vector<2x8xf32>
    %119 = tpu.iota {dimensions = array<i32: 0>} : vector<8x512xi32>
    %120 = tpu.iota {dimensions = array<i32: 1>} : vector<8x512xi32>
    %c6_i32 = arith.constant 6 : i32
    %121 = vector.broadcast %c6_i32 : i32 to vector<8x512xi32>
    %122 = arith.shrsi %120, %121 : vector<8x512xi32>
    %123 = arith.cmpi eq, %122, %119 : vector<8x512xi32>
    %cst_82 = arith.constant 1.000000e+00 : f32
    %cst_83 = arith.constant 0.000000e+00 : f32
    %124 = vector.broadcast %cst_82 : f32 to vector<8x512xf32>
    %125 = vector.broadcast %cst_83 : f32 to vector<8x512xf32>
    %126 = arith.select %123, %124, %125 : vector<8x512xi1>, vector<8x512xf32>
    %cst_84 = arith.constant dense<0.000000e+00> : vector<2x512xf32>
    %127 = tpu.matmul %118, %126, %cst_84 {dimension_numbers = #tpu.dot_dimension_numbers<[1], [0], [0], [1], [0, 0, 1, 1], [], []>} : vector<2x8xf32>, vector<8x512xf32>, vector<2x512xf32> -> vector<2x512xf32>
    %128 = tpu.iota {dimensions = array<i32: 0>} : vector<512x64xi32>
    %129 = tpu.iota {dimensions = array<i32: 1>} : vector<512x64xi32>
    %c63_i32 = arith.constant 63 : i32
    %130 = vector.broadcast %c63_i32 : i32 to vector<512x64xi32>
    %131 = arith.andi %128, %130 : vector<512x64xi32>
    %132 = arith.cmpi eq, %131, %129 : vector<512x64xi32>
    %cst_85 = arith.constant 1.000000e+00 : f32
    %cst_86 = arith.constant 0.000000e+00 : f32
    %133 = vector.broadcast %cst_85 : f32 to vector<512x64xf32>
    %134 = vector.broadcast %cst_86 : f32 to vector<512x64xf32>
    %135 = arith.select %132, %133, %134 : vector<512x64xi1>, vector<512x64xf32>
    %136 = arith.mulf %127, %76 : vector<2x512xf32>
    %cst_87 = arith.constant dense<0.000000e+00> : vector<2x64xf32>
    %137 = tpu.matmul %136, %135, %cst_87 {dimension_numbers = #tpu.dot_dimension_numbers<[1], [0], [0], [1], [0, 0, 1, 1], [], []>} : vector<2x512xf32>, vector<512x64xf32>, vector<2x64xf32> -> vector<2x64xf32>
    %c0_88 = arith.constant 0 : index
    %c0_89 = arith.constant 0 : index
    %138 = vector.load %arg26[%c0_88, %c0_89] : memref<2x64xf32, #tpu.memory_space<vmem>>, vector<2x64xf32>
    tpu.vector_store %arg26[%c0_88, %c0_89], %137 {strides = array<i32>} : memref<2x64xf32, #tpu.memory_space<vmem>>, vector<2x64xf32>,
    return
  }
  func.func @transform_0(%arg0: i32) -> (i32, i32) {
    %c0_i32 = arith.constant 0 : i32
    %c0_i32_0 = arith.constant 0 : i32
    return %arg0, %c0_i32 : i32, i32
  }
  func.func @transform_1(%arg0: i32) -> (i32, i32) {
    %c0_i32 = arith.constant 0 : i32
    %c0_i32_0 = arith.constant 0 : i32
    %c0_i32_1 = arith.constant 0 : i32
    return %c0_i32, %c0_i32_0 : i32, i32
  }
  func.func @transform_2(%arg0: i32) -> (i32, i32) {
    %c0_i32 = arith.constant 0 : i32
    %c0_i32_0 = arith.constant 0 : i32
    %c0_i32_1 = arith.constant 0 : i32
    return %c0_i32, %c0_i32_0 : i32, i32
  }
  func.func @transform_3(%arg0: i32) -> (i32, i32) {
    %c0_i32 = arith.constant 0 : i32
    %c0_i32_0 = arith.constant 0 : i32
    %c0_i32_1 = arith.constant 0 : i32
    return %c0_i32, %c0_i32_0 : i32, i32
  }
  func.func @transform_4(%arg0: i32) -> (i32, i32) {
    %c0_i32 = arith.constant 0 : i32
    %c0_i32_0 = arith.constant 0 : i32
    %c0_i32_1 = arith.constant 0 : i32
    return %c0_i32, %c0_i32_0 : i32, i32
  }
  func.func @transform_5(%arg0: i32) -> (i32, i32) {
    %c0_i32 = arith.constant 0 : i32
    %c0_i32_0 = arith.constant 0 : i32
    %c0_i32_1 = arith.constant 0 : i32
    return %c0_i32, %c0_i32_0 : i32, i32
  }
  func.func @transform_6(%arg0: i32) -> (i32, i32) {
    %c0_i32 = arith.constant 0 : i32
    %c0_i32_0 = arith.constant 0 : i32
    %c0_i32_1 = arith.constant 0 : i32
    return %c0_i32, %c0_i32_0 : i32, i32
  }
  func.func @transform_7(%arg0: i32) -> (i32, i32) {
    %c0_i32 = arith.constant 0 : i32
    %c0_i32_0 = arith.constant 0 : i32
    %c0_i32_1 = arith.constant 0 : i32
    return %c0_i32, %c0_i32_0 : i32, i32
  }
  func.func @transform_8(%arg0: i32) -> (i32, i32) {
    %c0_i32 = arith.constant 0 : i32
    %c0_i32_0 = arith.constant 0 : i32
    %c0_i32_1 = arith.constant 0 : i32
    return %c0_i32, %c0_i32_0 : i32, i32
  }
  func.func @transform_9(%arg0: i32) -> (i32, i32) {
    %c0_i32 = arith.constant 0 : i32
    %c0_i32_0 = arith.constant 0 : i32
    %c0_i32_1 = arith.constant 0 : i32
    return %c0_i32, %c0_i32_0 : i32, i32
  }
  func.func @transform_10(%arg0: i32) -> (i32, i32) {
    %c0_i32 = arith.constant 0 : i32
    %c0_i32_0 = arith.constant 0 : i32
    %c0_i32_1 = arith.constant 0 : i32
    return %c0_i32, %c0_i32_0 : i32, i32
  }
  func.func @transform_11(%arg0: i32) -> (i32, i32) {
    %c0_i32 = arith.constant 0 : i32
    %c0_i32_0 = arith.constant 0 : i32
    %c0_i32_1 = arith.constant 0 : i32
    return %c0_i32, %c0_i32_0 : i32, i32
  }
  func.func @transform_12(%arg0: i32) -> (i32, i32) {
    %c0_i32 = arith.constant 0 : i32
    %c0_i32_0 = arith.constant 0 : i32
    %c0_i32_1 = arith.constant 0 : i32
    return %c0_i32, %c0_i32_0 : i32, i32
  }
  func.func @transform_13(%arg0: i32) -> (i32, i32) {
    %c0_i32 = arith.constant 0 : i32
    %c0_i32_0 = arith.constant 0 : i32
    %c0_i32_1 = arith.constant 0 : i32
    return %c0_i32, %c0_i32_0 : i32, i32
  }
  func.func @transform_14(%arg0: i32) -> (i32, i32) {
    %c0_i32 = arith.constant 0 : i32
    %c0_i32_0 = arith.constant 0 : i32
    %c0_i32_1 = arith.constant 0 : i32
    return %c0_i32, %c0_i32_0 : i32, i32
  }
  func.func @transform_15(%arg0: i32) -> (i32, i32) {
    %c0_i32 = arith.constant 0 : i32
    %c0_i32_0 = arith.constant 0 : i32
    %c0_i32_1 = arith.constant 0 : i32
    return %c0_i32, %c0_i32_0 : i32, i32
  }
  func.func @transform_16(%arg0: i32) -> (i32, i32) {
    %c0_i32 = arith.constant 0 : i32
    %c0_i32_0 = arith.constant 0 : i32
    %c0_i32_1 = arith.constant 0 : i32
    return %c0_i32, %c0_i32_0 : i32, i32
  }
  func.func @transform_17(%arg0: i32) -> (i32, i32) {
    %c0_i32 = arith.constant 0 : i32
    %c0_i32_0 = arith.constant 0 : i32
    %c0_i32_1 = arith.constant 0 : i32
    return %c0_i32, %c0_i32_0 : i32, i32
  }
  func.func @transform_18(%arg0: i32) -> (i32, i32) {
    %c0_i32 = arith.constant 0 : i32
    %c0_i32_0 = arith.constant 0 : i32
    %c0_i32_1 = arith.constant 0 : i32
    return %c0_i32, %c0_i32_0 : i32, i32
  }
  func.func @transform_19(%arg0: i32) -> (i32, i32) {
    %c0_i32 = arith.constant 0 : i32
    %c0_i32_0 = arith.constant 0 : i32
    %c0_i32_1 = arith.constant 0 : i32
    return %c0_i32, %c0_i32_0 : i32, i32
  }
  func.func @transform_20(%arg0: i32) -> (i32, i32) {
    %c0_i32 = arith.constant 0 : i32
    %c0_i32_0 = arith.constant 0 : i32
    %c0_i32_1 = arith.constant 0 : i32
    return %c0_i32, %c0_i32_0 : i32, i32
  }
  func.func @transform_21(%arg0: i32) -> (i32, i32) {
    %c0_i32 = arith.constant 0 : i32
    %c0_i32_0 = arith.constant 0 : i32
    %c0_i32_1 = arith.constant 0 : i32
    return %c0_i32, %c0_i32_0 : i32, i32
  }
  func.func @transform_22(%arg0: i32) -> (i32, i32) {
    %c0_i32 = arith.constant 0 : i32
    %c0_i32_0 = arith.constant 0 : i32
    %c0_i32_1 = arith.constant 0 : i32
    return %c0_i32, %c0_i32_0 : i32, i32
  }
  func.func @transform_23(%arg0: i32) -> (i32, i32) {
    %c0_i32 = arith.constant 0 : i32
    %c0_i32_0 = arith.constant 0 : i32
    %c0_i32_1 = arith.constant 0 : i32
    return %c0_i32, %c0_i32_0 : i32, i32
  }
  func.func @transform_24(%arg0: i32) -> (i32, i32) {
    %c0_i32 = arith.constant 0 : i32
    %c0_i32_0 = arith.constant 0 : i32
    %c0_i32_1 = arith.constant 0 : i32
    return %c0_i32, %c0_i32_0 : i32, i32
  }
  func.func @transform_25(%arg0: i32) -> (i32, i32) {
    %c0_i32 = arith.constant 0 : i32
    %c0_i32_0 = arith.constant 0 : i32
    return %arg0, %c0_i32 : i32, i32
  }
}

</mosaic_0001>

<bundles_post_ra>
// kernel: audio2expression_forward.1
= control target key start
LH: loop header
LB: loop body
LE: loop exit
PB: predicated region body
PF: predicated region fallthrough
CT: control target
= control target key end

     0   :  { %s4928_s0 = inlined_call_operand.vmem [shape: bf16[16,512], index: 0, kind: input, shape index: {}]   ;;  %s4929_s1 = inlined_call_operand.vmem [shape: bf16[512,256], index: 1, kind: input, shape index: {}]   ;;  %s4930_s2 = inlined_call_operand.vmem [shape: f32[1,256], index: 2, kind: input, shape index: {}]   ;;  %s4931_s3 = inlined_call_operand.vmem [shape: bf16[256,128], index: 3, kind: input, shape index: {}]   ;;  %s4932_s4 = inlined_call_operand.vmem [shape: f32[1,128], index: 4, kind: input, shape index: {}]   ;;  %s4933_s5 = inlined_call_operand.vmem [shape: bf16[128,128], index: 5, kind: input, shape index: {}]   ;;  %s4934_s6 = inlined_call_operand.vmem [shape: f32[1,128], index: 6, kind: input, shape index: {}]   ;;  %s4935_s7 = inlined_call_operand.vmem [shape: bf16[128,64], index: 7, kind: input, shape index: {}]   ;;  %s4936_s8 = inlined_call_operand.vmem [shape: f32[1,64], index: 8, kind: input, shape index: {}]   ;;  %s4937_s9 = inlined_call_operand.vmem [shape: bf16[64,64], index: 9, kind: input, shape index: {}]   ;;  %s4938_s10 = inlined_call_operand.vmem [shape: f32[1,64], index: 10, kind: input, shape index: {}]   ;;  %s4939_s11 = inlined_call_operand.vmem [shape: bf16[64,64], index: 11, kind: input, shape index: {}]   ;;  %s4940_s12 = inlined_call_operand.vmem [shape: f32[1,64], index: 12, kind: input, shape index: {}]   ;;  %s4941_s13 = inlined_call_operand.vmem [shape: bf16[64,64], index: 13, kind: input, shape index: {}]   ;;  %s4942_s14 = inlined_call_operand.vmem [shape: f32[1,64], index: 14, kind: input, shape index: {}]   ;;  %s4943_s15 = inlined_call_operand.vmem [shape: bf16[512,256], index: 15, kind: input, shape index: {}]   ;;  %s4944_s16 = inlined_call_operand.vmem [shape: f32[1,256], index: 16, kind: input, shape index: {}]   ;;  %s4945_s17 = inlined_call_operand.vmem [shape: bf16[256,64], index: 17, kind: input, shape index: {}]   ;;  %s4946_s18 = inlined_call_operand.vmem [shape: f32[1,64], index: 18, kind: input, shape index: {}]   ;;  %s4947_s19 = inlined_call_operand.vmem [shape: bf16[64,16], index: 19, kind: input, shape index: {}]   ;;  %s4948_s20 = inlined_call_operand.vmem [shape: f32[1,16], index: 20, kind: input, shape index: {}]   ;;  %s4949_s21 = inlined_call_operand.vmem [shape: bf16[16,8], index: 21, kind: input, shape index: {}]   ;;  %s4950_s22 = inlined_call_operand.vmem [shape: f32[1,8], index: 22, kind: input, shape index: {}]   ;;  %s4951_s23 = inlined_call_operand.vmem [shape: bf16[8,8], index: 23, kind: input, shape index: {}]   ;;  %s4952_s24 = inlined_call_operand.vmem [shape: f32[1,8], index: 24, kind: input, shape index: {}]   ;;  %s4953_s25 = inlined_call_operand.hbm [shape: f32[2,64], index: 25, kind: output, shape index: {}]  }
   0x1   :  { %4962 = sst [smem:[#allocation6_spill]] %s4928_s0 }
   0x2   :  { %4963 = sst [smem:[#allocation7_spill]] %s4929_s1 }
   0x3   :  { %4964 = sst [smem:[#allocation8_spill]] %s4930_s2 }
   0x4   :  { %4965 = sst [smem:[#allocation9_spill]] %s4931_s3 }
   0x5   :  { %4966 = sst [smem:[#allocation10_spill]] %s4932_s4 }
   0x6   :  { %4967 = sst [smem:[#allocation11_spill]] %s4933_s5 }
   0x7   :  { %4968 = sst [smem:[#allocation12_spill]] %s4934_s6 }
   0x8   :  { %4969 = sst [smem:[#allocation13_spill]] %s4935_s7 }
   0x9   :  { %4970 = sst [smem:[#allocation14_spill]] %s4936_s8 }
   0xa   :  { %4971 = sst [smem:[#allocation15_spill]] %s4937_s9 }
   0xb   :  { %s4972_s6 = sld [smem:[#allocation7_spill]] }
   0xc   :  { %s4973_s30 = sld [smem:[#allocation6_spill]] }
   0xd   :  { %s4974_s9 = sld [smem:[#allocation9_spill]] }
  0x11   :  { %v3328_v0 = vld [vmem:[%s4972_s6 + $0x74] ss:$8 sps:$4 sm:$0xff]   ;;  %v3332_v2 = vld [vmem:[%s4972_s6 + $0x70] ss:$8 sps:$4 sm:$0xff]   ;;  %v3334_v4 = vld [vmem:[%s4972_s6 + $0x64] ss:$8 sps:$4 sm:$0xff]  }
  0x12   :  { %v3330_v1 = vld [vmem:[%s4972_s6 + $0x174] ss:$8 sps:$4 sm:$0xff]   ;;  %502 = vmatprep.subr.bf16.mxu0 %v3328_v0  ;;  %v3333_v3 = vld [vmem:[%s4972_s6 + $0x170] ss:$8 sps:$4 sm:$0xff]   ;;  %v3336_v5 = vld [vmem:[%s4972_s6 + $0x164] ss:$8 sps:$4 sm:$0xff]  }
  0x13   :  { %545 = vmatprep.subr.bf16.mxu1 %v3330_v1  ;;  %503 = vmatpush1.bf16.msra.mxu0 %v3332_v2  ;;  %v3338_v6 = vld [vmem:[%s4972_s6 + $0x60] ss:$8 sps:$4 sm:$0xff]   ;;  %v3340_v8 = vld [vmem:[%s4972_s6 + $0x54] ss:$8 sps:$4 sm:$0xff]   ;;  %v3344_v10 = vld [vmem:[%s4972_s6 + $0x50] ss:$8 sps:$4 sm:$0xff]  }
  0x14   :  { %546 = vmatpush1.bf16.msra.mxu1 %v3333_v3  ;;  %504 = vmatprep.subr.bf16.mxu0 %v3334_v4  ;;  %v3339_v7 = vld [vmem:[%s4972_s6 + $0x160] ss:$8 sps:$4 sm:$0xff]   ;;  %v3342_v9 = vld [vmem:[%s4972_s6 + $0x154] ss:$8 sps:$4 sm:$0xff]   ;;  %v3345_v11 = vld [vmem:[%s4972_s6 + $0x150] ss:$8 sps:$4 sm:$0xff]  }
  0x15   :  { %547 = vmatprep.subr.bf16.mxu1 %v3336_v5  ;;  %v3346_v12 = vld [vmem:[%s4972_s6 + $0x44] ss:$8 sps:$4 sm:$0xff]   ;;  %v3350_v14 = vld [vmem:[%s4972_s6 + $0x40] ss:$8 sps:$4 sm:$0xff]   ;;  %v3352_v16 = vld [vmem:[%s4972_s6 + $0x34] ss:$8 sps:$4 sm:$0xff]  }
  0x16   :  { %v3348_v13 = vld [vmem:[%s4972_s6 + $0x144] ss:$8 sps:$4 sm:$0xff]   ;;  %v3351_v15 = vld [vmem:[%s4972_s6 + $0x140] ss:$8 sps:$4 sm:$0xff]   ;;  %v3354_v17 = vld [vmem:[%s4972_s6 + $0x134] ss:$8 sps:$4 sm:$0xff]  }
  0x17   :  { %505 = vmatpush1.bf16.msra.mxu0 %v3338_v6  ;;  %v3356_v18 = vld [vmem:[%s4972_s6 + $0x30] ss:$8 sps:$4 sm:$0xff]   ;;  %v3358_v20 = vld [vmem:[%s4972_s6 + $0x24] ss:$8 sps:$4 sm:$0xff]   ;;  %v3362_v22 = vld [vmem:[%s4972_s6 + $0x20] ss:$8 sps:$4 sm:$0xff]  }
  0x18   :  { %548 = vmatpush1.bf16.msra.mxu1 %v3339_v7  ;;  %506 = vmatprep.subr.bf16.mxu0 %v3340_v8  ;;  %v3357_v19 = vld [vmem:[%s4972_s6 + $0x130] ss:$8 sps:$4 sm:$0xff]   ;;  %v3360_v21 = vld [vmem:[%s4972_s6 + $0x124] ss:$8 sps:$4 sm:$0xff]   ;;  %v3363_v23 = vld [vmem:[%s4972_s6 + $0x120] ss:$8 sps:$4 sm:$0xff]  }
  0x19   :  { %549 = vmatprep.subr.bf16.mxu1 %v3342_v9  ;;  %v3364_v24 = vld [vmem:[%s4972_s6 + $0x14] ss:$8 sps:$4 sm:$0xff]   ;;  %v3368_v26 = vld [vmem:[%s4972_s6 + $0x10] ss:$8 sps:$4 sm:$0xff]   ;;  %v3370_v28 = vld [vmem:[%s4972_s6 + $0x4] ss:$8 sps:$4 sm:$0xff]  }
  0x1a   :  { %v3366_v25 = vld [vmem:[%s4972_s6 + $0x114] ss:$8 sps:$4 sm:$0xff]   ;;  %v3369_v27 = vld [vmem:[%s4972_s6 + $0x110] ss:$8 sps:$4 sm:$0xff]   ;;  %v3372_v29 = vld [vmem:[%s4972_s6 + $0x104] ss:$8 sps:$4 sm:$0xff]  }
  0x1b   :  { %507 = vmatpush1.bf16.msra.mxu0 %v3344_v10  ;;  %v3374_v30 = vld [vmem:[%s4972_s6] ss:$8 sps:$4 sm:$0xff]   ;;  %v3376_v32 = vld [vmem:[%s4972_s6 + $0xf4] ss:$8 sps:$4 sm:$0xff]   ;;  %v3380_v34 = vld [vmem:[%s4972_s6 + $0xf0] ss:$8 sps:$4 sm:$0xff]  }
  0x1c   :  { %550 = vmatpush1.bf16.msra.mxu1 %v3345_v11  ;;  %508 = vmatprep.subr.bf16.mxu0 %v3346_v12  ;;  %v3375_v31 = vld [vmem:[%s4972_s6 + $0x100] ss:$8 sps:$4 sm:$0xff]   ;;  %v3378_v33 = vld [vmem:[%s4972_s6 + $0x1f4] ss:$8 sps:$4 sm:$0xff]   ;;  %v3381_v35 = vld [vmem:[%s4972_s6 + $0x1f0] ss:$8 sps:$4 sm:$0xff]  }
  0x1d   :  { %551 = vmatprep.subr.bf16.mxu1 %v3348_v13  ;;  %v3382_v36 = vld [vmem:[%s4972_s6 + $0xe4] ss:$8 sps:$4 sm:$0xff]   ;;  %v3386_v38 = vld [vmem:[%s4972_s6 + $0xe0] ss:$8 sps:$4 sm:$0xff]   ;;  %v3388_v40 = vld [vmem:[%s4972_s6 + $0xd4] ss:$8 sps:$4 sm:$0xff]  }
  0x1e   :  { %v3384_v37 = vld [vmem:[%s4972_s6 + $0x1e4] ss:$8 sps:$4 sm:$0xff]   ;;  %v3387_v39 = vld [vmem:[%s4972_s6 + $0x1e0] ss:$8 sps:$4 sm:$0xff]   ;;  %v3390_v41 = vld [vmem:[%s4972_s6 + $0x1d4] ss:$8 sps:$4 sm:$0xff]  }
  0x1f   :  { %509 = vmatpush1.bf16.msra.mxu0 %v3350_v14  ;;  %v3392_v42 = vld [vmem:[%s4972_s6 + $0xd0] ss:$8 sps:$4 sm:$0xff]   ;;  %v3394_v44 = vld [vmem:[%s4972_s6 + $0xc4] ss:$8 sps:$4 sm:$0xff]   ;;  %v3398_v46 = vld [vmem:[%s4972_s6 + $0xc0] ss:$8 sps:$4 sm:$0xff]  }
  0x20   :  { %552 = vmatpush1.bf16.msra.mxu1 %v3351_v15  ;;  %510 = vmatprep.subr.bf16.mxu0 %v3352_v16  ;;  %v3393_v43 = vld [vmem:[%s4972_s6 + $0x1d0] ss:$8 sps:$4 sm:$0xff]   ;;  %v3396_v45 = vld [vmem:[%s4972_s6 + $0x1c4] ss:$8 sps:$4 sm:$0xff]   ;;  %v3399_v47 = vld [vmem:[%s4972_s6 + $0x1c0] ss:$8 sps:$4 sm:$0xff]  }
  0x21   :  { %553 = vmatprep.subr.bf16.mxu1 %v3354_v17  ;;  %v3400_v48 = vld [vmem:[%s4972_s6 + $0xb4] ss:$8 sps:$4 sm:$0xff]   ;;  %v3404_v52 = vld [vmem:[%s4972_s6 + $0xb0] ss:$8 sps:$4 sm:$0xff]   ;;  %v3406_v54 = vld [vmem:[%s4972_s6 + $0xa4] ss:$8 sps:$4 sm:$0xff]  }
  0x22   :  { %v3426_v49 = vld [vmem:[%s4973_s30 + $0x4] ss:$16 sps:$4 sm:$0xff]   ;;  %v3429_v51 = vld [vmem:[%s4973_s30 + $0xc] ss:$16 sps:$4 sm:$0xff]   ;;  %v3405_v53 = vld [vmem:[%s4972_s6 + $0x1b0] ss:$8 sps:$4 sm:$0xff]  }
  0x23   :  { %511 = vmatpush1.bf16.msra.mxu0 %v3356_v18  ;;  %v3402_v50 = vld [vmem:[%s4972_s6 + $0x1b4] ss:$8 sps:$4 sm:$0xff]   ;;  %534 = vmatprep.mubr.bf16.mxu0 %v3426_v49  ;;  %v3408_v55 = vld [vmem:[%s4972_s6 + $0x1a4] ss:$8 sps:$4 sm:$0xff]   ;;  %v3410_v56 = vld [vmem:[%s4972_s6 + $0xa0] ss:$8 sps:$4 sm:$0xff]  }
  0x24   :  { %554 = vmatpush1.bf16.msra.mxu1 %v3357_v19  ;;  %512 = vmatprep.subr.bf16.mxu0 %v3358_v20  ;;  %v3411_v57 = vld [vmem:[%s4972_s6 + $0x1a0] ss:$8 sps:$4 sm:$0xff]   ;;  %v3412_v58 = vld [vmem:[%s4972_s6 + $0x94] ss:$8 sps:$4 sm:$0xff]   ;;  %v3416_v60 = vld [vmem:[%s4972_s6 + $0x90] ss:$8 sps:$4 sm:$0xff]  }
  0x25   :  { %555 = vmatprep.subr.bf16.mxu1 %v3360_v21  ;;  %577 = vmatprep.mubr.bf16.mxu1 %v3429_v51  ;;  %v3414_v59 = vld [vmem:[%s4972_s6 + $0x194] ss:$8 sps:$4 sm:$0xff]   ;;  %v3417_v61 = vld [vmem:[%s4972_s6 + $0x190] ss:$8 sps:$4 sm:$0xff]   ;;  %v3418_v62 = vld [vmem:[%s4972_s6 + $0x84] ss:$8 sps:$4 sm:$0xff]  }
  0x26   :  { %v3420_v63 = vld [vmem:[%s4972_s6 + $0x184] ss:$8 sps:$4 sm:$0xff]   ;;  %v3422_v0 = vld [vmem:[%s4972_s6 + $0x80] ss:$8 sps:$4 sm:$0xff]   ;;  %v3430_v2 = vld [vmem:[%s4974_s9 + $0x78] sm:$0xff]  }
  0x27   :  { %513 = vmatpush1.bf16.msra.mxu0 %v3362_v22  ;;  %v3423_v1 = vld [vmem:[%s4972_s6 + $0x180] ss:$8 sps:$4 sm:$0xff]   ;;  %v3431_v5 = vld [vmem:[%s4974_s9 + $0x38] sm:$0xff]   ;;  %v3432_v6 = vld [vmem:[%s4974_s9 + $0x70] sm:$0xff]  }
  0x28   :  { %556 = vmatpush1.bf16.msra.mxu1 %v3363_v23  ;;  %514 = vmatprep.subr.bf16.mxu0 %v3364_v24  ;;  %v3424_v3 = vld [vmem:[%s4973_s30] ss:$16 sps:$4 sm:$0xff]   ;;  %v3427_v4 = vld [vmem:[%s4973_s30 + $0x8] ss:$16 sps:$4 sm:$0xff]  }
  0x29   :  { %557 = vmatprep.subr.bf16.mxu1 %v3366_v25  ;;  %v3433_v7 = vld [vmem:[%s4974_s9 + $0x30] sm:$0xff]   ;;  %v3434_v8 = vld [vmem:[%s4974_s9 + $0x68] sm:$0xff]   ;;  %v3436_v10 = vld [vmem:[%s4974_s9 + $0x60] sm:$0xff]  }
  0x2a   :  { %v3435_v9 = vld [vmem:[%s4974_s9 + $0x28] sm:$0xff]   ;;  %v3437_v11 = vld [vmem:[%s4974_s9 + $0x20] sm:$0xff]  }
  0x2b   :  { %515 = vmatpush1.bf16.msra.mxu0 %v3368_v26 }
  0x2c   :  { %558 = vmatpush1.bf16.msra.mxu1 %v3369_v27  ;;  %516 = vmatprep.subr.bf16.mxu0 %v3370_v28 }
  0x2d   :  { %559 = vmatprep.subr.bf16.mxu1 %v3372_v29 }
  0x2f   :  { %517 = vmatpush1.bf16.msra.mxu0 %v3374_v30 }
  0x30   :  { %560 = vmatpush1.bf16.msra.mxu1 %v3375_v31  ;;  %518 = vmatprep.subr.bf16.mxu0 %v3376_v32 }
  0x31   :  { %561 = vmatprep.subr.bf16.mxu1 %v3378_v33 }
  0x33   :  { %519 = vmatpush2.bf16.msra.mxu0 %v3380_v34 }
  0x34   :  { %562 = vmatpush2.bf16.msra.mxu1 %v3381_v35  ;;  %520 = vmatprep.subr.bf16.mxu0 %v3382_v36 }
  0x35   :  { %563 = vmatprep.subr.bf16.mxu1 %v3384_v37 }
  0x37   :  { %521 = vmatpush2.bf16.msra.mxu0 %v3386_v38 }
  0x38   :  { %564 = vmatpush2.bf16.msra.mxu1 %v3387_v39  ;;  %522 = vmatprep.subr.bf16.mxu0 %v3388_v40 }
  0x39   :  { %565 = vmatprep.subr.bf16.mxu1 %v3390_v41 }
  0x3b   :  { %523 = vmatpush2.bf16.msra.mxu0 %v3392_v42 }
  0x3c   :  { %566 = vmatpush2.bf16.msra.mxu1 %v3393_v43  ;;  %524 = vmatprep.subr.bf16.mxu0 %v3394_v44 }
  0x3d   :  { %567 = vmatprep.subr.bf16.mxu1 %v3396_v45 }
  0x3f   :  { %525 = vmatpush2.bf16.msra.mxu0 %v3398_v46 }
  0x40   :  { %568 = vmatpush2.bf16.msra.mxu1 %v3399_v47  ;;  %526 = vmatprep.subr.bf16.mxu0 %v3400_v48 }
  0x41   :  { %569 = vmatprep.subr.bf16.mxu1 %v3402_v50 }
  0x43   :  { %527 = vmatpush2.bf16.msra.mxu0 %v3404_v52 }
  0x44   :  { %570 = vmatpush2.bf16.msra.mxu1 %v3405_v53  ;;  %528 = vmatprep.subr.bf16.mxu0 %v3406_v54 }
  0x45   :  { %571 = vmatprep.subr.bf16.mxu1 %v3408_v55 }
  0x47   :  { %529 = vmatpush2.bf16.msra.mxu0 %v3410_v56 }
  0x48   :  { %572 = vmatpush2.bf16.msra.mxu1 %v3411_v57  ;;  %530 = vmatprep.subr.bf16.mxu0 %v3412_v58 }
  0x49   :  { %573 = vmatprep.subr.bf16.mxu1 %v3414_v59 }
  0x4b   :  { %531 = vmatpush2.bf16.msra.mxu0 %v3416_v60 }
  0x4c   :  { %574 = vmatpush2.bf16.msra.mxu1 %v3417_v61  ;;  %532 = vmatprep.subr.bf16.mxu0 %v3418_v62 }
  0x4d   :  { %575 = vmatprep.subr.bf16.mxu1 %v3420_v63 }
  0x4f   :  { %533 = vmatpush2.bf16.msra.mxu0 %v3422_v0 }
  0x50   :  { %576 = vmatpush2.bf16.msra.mxu1 %v3423_v1  ;;  %3072 = vmatprep.subr.bf16.mxu0 %v3430_v2 }
  0x52   :  { %535 = vmatmul.mubr.bf16.vlgmr.msra.gmra.mxu0 %v3424_v3 }
  0x53   :  { %578 = vmatmul.mubr.bf16.vlgmr.msra.gmra.mxu1 %v3427_v4  ;;  %3073 = vmatpush3.bf16.msra.mxu0 %v3431_v5 }
  0x54   :  { %3074 = vmatprep.subr.bf16.mxu0 %v3432_v6 }
  0x57   :  { %3075 = vmatpush3.bf16.msra.mxu0 %v3433_v7 }
  0x58   :  { %3076 = vmatprep.subr.bf16.mxu0 %v3434_v8 }
  0x5b   :  { %3077 = vmatpush3.bf16.msra.mxu0 %v3435_v9 }
  0x5c   :  { %3078 = vmatprep.subr.bf16.mxu0 %v3436_v10 }
  0x5f   :  { %3079 = vmatpush3.bf16.msra.mxu0 %v3437_v11 }
  0x60   :  { %30 = vsyncpa [#allocation4], 0  ;;  %v3438_v12 = vld [vmem:[%s4974_s9 + $0x58] sm:$0xff]   ;;  %v3440_v14 = vld [vmem:[%s4974_s9 + $0x50] sm:$0xff]   ;;  %s4975_s1 = sld [smem:[#allocation11_spill]]  ;;  %v3618_v21 = vmov 0.0   ;;  %v152_v25 = vlaneseq }
  0x61   :  { %v3439_v13 = vld [vmem:[%s4974_s9 + $0x18] sm:$0xff]   ;;  %3080 = vmatprep.subr.bf16.mxu0 %v3438_v12  ;;  %v3441_v15 = vld [vmem:[%s4974_s9 + $0x10] sm:$0xff]   ;;  %v3442_v16 = vld [vmem:[%s4974_s9 + $0x48] sm:$0xff]   ;;  %3225 = vmatprep.subr.bf16.mxu1 %v3618_v21  ;;  %s4976_s29 = sld [smem:[#allocation8_spill]]  ;;  %vm3619_vm0 = vmmov 0   ;;  %vm1052_vm1 = vcmask 523264  }
  0x62   :  { %v3443_v17 = vld [vmem:[%s4974_s9 + $0x8] sm:$0xff]   ;;  %v3444_v18 = vld [vmem:[%s4974_s9 + $0x40] sm:$0xff]   ;;  %v4025_v26 = vshrl.u32 %v152_v25, 7  ;;  %3241 = vmatprep.mubr.msk.bf16.mxu1 %vm3619_vm0, %v3618_v21  ;;  %s4977_s28 = sld [smem:[#allocation13_spill]]  ;;  %vm4960_vm2 = vcmask 517120   ;;  %vm1287_vm3 = vcmask 1041920  }
  0x63   :  { %3081 = vmatpush3.bf16.msra.mxu0 %v3439_v13  ;;  %v3445_v19 = vld [vmem:[%s4974_s9] sm:$0xff]   ;;  %s4978_s27 = sld [smem:[#allocation10_spill]]  ;;  %vm2106_vm4 = vcmask 130048   ;;  %vm2162_vm5 = vcmask 1043456   ;;  %vm4961_vm6 = vcmask 64512  }
  0x64   :  { %3082 = vmatprep.subr.bf16.mxu0 %v3440_v14  ;;  %v154_v27 = vsub.s32 0, %v4025_v26  ;;  %v158_v29 = vsub.s32 1, %v4025_v26  ;;  %s4979_s7 = sld [smem:[#allocation15_spill]] }
  0x65   :  { %s4980_s26 = sld [smem:[#allocation12_spill]] }
  0x66   :  { %v3446_v20 = vld [vmem:[%s4975_s1 + $0x38] sm:$0xff]   ;;  %v3447_v22 = vld [vmem:[%s4975_s1 + $0x30] sm:$0xff]   ;;  %v3448_v23 = vld [vmem:[%s4975_s1 + $0x28] sm:$0xff]  }
  0x67   :  { %3083 = vmatpush3.bf16.msra.mxu0 %v3441_v15  ;;  %3226 = vmatpush3.bf16.msra.mxu1 %v3446_v20  ;;  %v3449_v24 = vld [vmem:[%s4975_s1 + $0x20] sm:$0xff]   ;;  %v3450_v58 = vld [vmem:[%s4975_s1 + $0x18] sm:$0xff]   ;;  %v3451_v59 = vld [vmem:[%s4975_s1 + $0x10] sm:$0xff]  }
  0x68   :  { %3084 = vmatprep.subr.bf16.mxu0 %v3442_v16  ;;  %3227 = vmatprep.subr.bf16.mxu1 %v3618_v21  ;;  %v150_v28 = vld [vmem:[%s4976_s29] sm:$0x3]  ;;  %v3452_v60 = vld [vmem:[%s4975_s1 + $0x8] sm:$0xff]   ;;  %v3454_v62 = vld [vmem:[%s4977_s28 + $0x38] sm:$0xff]  }
  0x69   :  { %v155_v30 = vrot.slane %v150_v28, %v154_v27  ;;  %v159_v31 = vrot.slane %v150_v28, %v158_v29  ;;  %v3453_v61 = vld [vmem:[%s4975_s1] sm:$0xff]   ;;  %v3455_v63 = vld [vmem:[%s4977_s28 + $0x30] sm:$0xff]   ;;  %v3456_v0 = vld [vmem:[%s4977_s28 + $0x28] sm:$0xff]   ;;  %s4981_s1 = sld [smem:[#allocation14_spill]] }
  0x6a   :  { %v3457_v1 = vld [vmem:[%s4977_s28 + $0x20] sm:$0xff]   ;;  %v3458_v2 = vld [vmem:[%s4977_s28 + $0x18] sm:$0xff]  }
  0x6b   :  { %3085 = vmatpush3.bf16.msra.mxu0 %v3443_v17  ;;  %3228 = vmatpush3.bf16.msra.mxu1 %v3447_v22  ;;  %v2856_v4 = vld [vmem:[%s4978_s27] ss:$0 sm:$0xff]  ;;  %v3459_v17 = vld [vmem:[%s4977_s28 + $0x10] sm:$0xff]   ;;  %v3462_v20 = vld [vmem:[%s4979_s7 + $0x18] sm:$0xff]  }
  0x6c   :  { %3086 = vmatprep.subr.bf16.mxu0 %v3444_v18  ;;  %3229 = vmatprep.subr.bf16.mxu1 %v3618_v21  ;;  %v3460_v18 = vld [vmem:[%s4977_s28 + $0x8] sm:$0xff]   ;;  %v2873_v22 = vld [vmem:[%s4980_s26] ss:$0 sm:$0xff] }
  0x6f   :  { %3087 = vmatpush3.bf16.msra.mxu0 %v3445_v19  ;;  %3230 = vmatpush3.bf16.msra.mxu1 %v3448_v23  ;;  %v3461_v19 = vld [vmem:[%s4977_s28] sm:$0xff]  }
  0x70   :  { %3245 = vmatprep.subr.bf16.mxu0 %v3618_v21  ;;  %3231 = vmatprep.subr.bf16.mxu1 %v3618_v21 }
  0x73   :  { %3232 = vmatpush3.bf16.msra.mxu1 %v3449_v24 }
  0x74   :  { %3233 = vmatprep.subr.bf16.mxu1 %v3618_v21 }
  0x77   :  { %3234 = vmatpush3.bf16.msra.mxu1 %v3450_v58  ;;  %v2891_v58 = vld [vmem:[%s4938_s10] ss:$0 sm:$0xff] }
  0x78   :  { %3235 = vmatprep.subr.bf16.mxu1 %v3618_v21 }
  0x7b   :  { %3236 = vmatpush3.bf16.msra.mxu1 %v3451_v59 }
  0x7c   :  { %3237 = vmatprep.subr.bf16.mxu1 %v3618_v21 }
  0x7f   :  { %3238 = vmatpush3.bf16.msra.mxu1 %v3452_v60 }
  0x80   :  { %3239 = vmatprep.subr.bf16.mxu1 %v3618_v21 }
  0x83   :  { %3240 = vmatpush3.bf16.msra.mxu1 %v3453_v61 }
  0x84   :  { %3265 = vmatprep.subr.bf16.mxu1 %v3618_v21 }
 0x112   :  { %v536_v32 = vpop.f32.mrf.mxu0 }
 0x113   :  { %v579_v33 = vpop.f32.mrf.mxu1  ;;  %v537_v34 = vadd.f32 %v536_v32, %v155_v30 }
 0x114   :  { %v538_v35 = vpop.f32.mrf.mxu0 }
 0x115   :  { %v581_v36 = vpop.f32.mrf.mxu1  ;;  %v539_v37 = vadd.f32 %v538_v35, %v159_v31  ;;  %v580_v42 = vadd.f32 %v579_v33, %v537_v34 }
 0x116   :  { %v540_v38 = vpop.f32.mrf.mxu0 }
 0x117   :  { %v583_v39 = vpop.f32.mrf.mxu1  ;;  %v582_v40 = vadd.f32 %v581_v36, %v539_v37  ;;  %v541_v41 = vadd.f32 %v540_v38, %v155_v30  ;;  %v588_v50 = vmul.f32 0.02, %v580_v42  ;;  %v3463_v38 = vld [vmem:[%s4979_s7 + $0x10] sm:$0xff]  }
 0x118   :  { %v542_v43 = vpop.f32.mrf.mxu0 }
 0x119   :  { %v584_v44 = vadd.f32 %v583_v39, %v541_v41  ;;  %v543_v45 = vadd.f32 %v542_v43, %v159_v31  ;;  %v585_v46 = vpop.f32.mrf.mxu1  ;;  %v589_v47 = vmul.f32 0.02, %v582_v40  ;;  %v592_v55 = vmax.f32 %v580_v42, %v588_v50  ;;  %v3464_v39 = vld [vmem:[%s4979_s7 + $0x8] sm:$0xff]   ;;  %v2882_v41 = vld [vmem:[%s4981_s1] ss:$0 sm:$0xff] }
 0x11b   :  { %v590_v48 = vmul.f32 0.02, %v584_v44  ;;  %v586_v49 = vadd.f32 %v585_v46, %v543_v45  ;;  %v593_v53 = vmax.f32 %v582_v40, %v589_v47  ;;  %v3465_v40 = vld [vmem:[%s4979_s7] sm:$0xff]  }
 0x11d   :  { %v591_v51 = vmul.f32 0.02, %v586_v49  ;;  %v594_v52 = vmax.f32 %v584_v44, %v590_v48 }
 0x11f   :  { %v595_v54 = vmax.f32 %v586_v49, %v591_v51  ;;  %v596_v57 = vpack.c.bf16 %v594_v52, %v592_v55  ;;  %v3466_v52 = vld [vmem:[%s4939_s11 + $0x18] sm:$0xff]   ;;  %v3468_v55 = vld [vmem:[%s4939_s11 + $0x8] sm:$0xff]  }
 0x121   :  { %v597_v56 = vpack.c.bf16 %v595_v54, %v593_v53  ;;  %v3467_v54 = vld [vmem:[%s4939_s11 + $0x10] sm:$0xff]  }
 0x123   :  { %765 = vmatprep.mubr.bf16.mxu0 %v597_v56  ;;  %v3469_v56 = vld [vmem:[%s4939_s11] sm:$0xff]  }
 0x124   :  { %766 = vmatmul.mubr.bf16.vlgmr.msra.gmra.mxu0 %v596_v57  ;;  %v3470_v57 = vld [vmem:[%s4941_s13 + $0x18] sm:$0xff]  }
 0x125   :  { %3261 = vmatprep.mubr.msk.bf16.mxu0 %vm3619_vm0, %v3618_v21  ;;  %3246 = vmatpush3.bf16.msra.mxu0 %v3454_v62 }
 0x126   :  { %3247 = vmatprep.subr.bf16.mxu0 %v3618_v21 }
 0x129   :  { %3248 = vmatpush3.bf16.msra.mxu0 %v3455_v63 }
 0x12a   :  { %3249 = vmatprep.subr.bf16.mxu0 %v3618_v21 }
 0x12d   :  { %3250 = vmatpush3.bf16.msra.mxu0 %v3456_v0 }
 0x12e   :  { %3251 = vmatprep.subr.bf16.mxu0 %v3618_v21 }
 0x131   :  { %3252 = vmatpush3.bf16.msra.mxu0 %v3457_v1 }
 0x132   :  { %3253 = vmatprep.subr.bf16.mxu0 %v3618_v21 }
 0x135   :  { %3254 = vmatpush3.bf16.msra.mxu0 %v3458_v2 }
 0x136   :  { %3255 = vmatprep.subr.bf16.mxu0 %v3618_v21 }
 0x139   :  { %3256 = vmatpush3.bf16.msra.mxu0 %v3459_v17 }
 0x13a   :  { %3257 = vmatprep.subr.bf16.mxu0 %v3618_v21 }
 0x13d   :  { %3258 = vmatpush3.bf16.msra.mxu0 %v3460_v18 }
 0x13e   :  { %3259 = vmatprep.subr.bf16.mxu0 %v3618_v21 }
 0x141   :  { %3260 = vmatpush3.bf16.msra.mxu0 %v3461_v19 }
 0x142   :  { %3289 = vmatprep.subr.bf16.mxu0 %v3618_v21 }
 0x1e4   :  { %v3088_v3 = vpop.f32.mrf.mxu0 }
 0x1e6   :  { %v3089_v5 = vpop.f32.mrf.mxu0 }
 0x1e7   :  { %v3090_v6 = vadd.f32 %v3089_v5, %v3088_v3 }
 0x1e8   :  { %v3091_v7 = vpop.f32.mrf.mxu0 }
 0x1e9   :  { %v768_v8 = vadd.f32 %v3090_v6, %v2856_v4  ;;  %v3471_v6 = vld [vmem:[%s4941_s13 + $0x10] sm:$0xff]  }
 0x1ea   :  { %v3092_v9 = vpop.f32.mrf.mxu0 }
 0x1eb   :  { %v3093_v10 = vadd.f32 %v3092_v9, %v3091_v7  ;;  %v774_v11 = vmul.f32 0.02, %v768_v8  ;;  %v3472_v7 = vld [vmem:[%s4941_s13 + $0x8] sm:$0xff]   ;;  %v2897_v9 = vld [vmem:[%s4940_s12] ss:$0 sm:$0xff] }
 0x1ed   :  { %v771_v12 = vadd.f32 %v3093_v10, %v2856_v4  ;;  %v776_v14 = vmax.f32 %v768_v8, %v774_v11  ;;  %v3473_v8 = vld [vmem:[%s4941_s13] sm:$0xff]  }
 0x1ef   :  { %v775_v13 = vmul.f32 0.02, %v771_v12 }
 0x1f1   :  { %v777_v15 = vmax.f32 %v771_v12, %v775_v13 }
 0x1f3   :  { %v778_v16 = vpack.c.bf16 %v777_v15, %v776_v14 }
 0x1f5   :  { %3242 = vmatmul.mubr.bf16.vlgmr.msra.gmra.mxu1 %v778_v16 }
 0x1f6   :  { %3273 = vmatprep.mubr.msk.bf16.mxu1 %vm3619_vm0, %v3618_v21  ;;  %3266 = vmatpush3.bf16.msra.mxu1 %v3462_v20 }
 0x1f7   :  { %3267 = vmatprep.subr.bf16.mxu1 %v3618_v21 }
 0x1fa   :  { %3268 = vmatpush3.bf16.msra.mxu1 %v3463_v38  ;;  %v3494_v38 = vld [vmem:[%s4943_s15 + $0x44] ss:$8 sps:$4 sm:$0xff]  }
 0x1fb   :  { %3269 = vmatprep.subr.bf16.mxu1 %v3618_v21 }
 0x1fe   :  { %3270 = vmatpush3.bf16.msra.mxu1 %v3464_v39  ;;  %v3497_v39 = vld [vmem:[%s4943_s15 + $0x144] ss:$8 sps:$4 sm:$0xff]  }
 0x1ff   :  { %3271 = vmatprep.subr.bf16.mxu1 %v3618_v21 }
 0x202   :  { %3272 = vmatpush3.bf16.msra.mxu1 %v3465_v40  ;;  %v3492_v40 = vld [vmem:[%s4943_s15 + $0x40] ss:$8 sps:$4 sm:$0xff]  }
 0x203   :  { %3277 = vmatprep.subr.bf16.mxu1 %v3618_v21 }
 0x2b5   :  { %v884_v23 = vpop.f32.mrf.mxu1 }
 0x2b6   :  { %v885_v24 = vadd.f32 %v2873_v22, %v884_v23  ;;  %v3476_v23 = vld [vmem:[%s4943_s15 + $0x74] ss:$8 sps:$4 sm:$0xff]  }
 0x2b7   :  { %v3243_v28 = vpop.f32.mrf.mxu1 }
 0x2b8   :  { %v891_v31 = vmul.f32 0.02, %v885_v24  ;;  %v3479_v28 = vld [vmem:[%s4943_s15 + $0x174] ss:$8 sps:$4 sm:$0xff]  }
 0x2b9   :  { %v887_v30 = vpop.f32.mrf.mxu1 }
 0x2ba   :  { %v888_v32 = vadd.f32 %v2873_v22, %v887_v30  ;;  %v893_v35 = vmax.f32 %v885_v24, %v891_v31  ;;  %v3474_v22 = vld [vmem:[%s4943_s15 + $0x70] ss:$8 sps:$4 sm:$0xff]   ;;  %v3482_v30 = vld [vmem:[%s4943_s15 + $0x64] ss:$8 sps:$4 sm:$0xff]  }
 0x2bb   :  { %v3244_v33 = vpop.f32.mrf.mxu1  ;;  %v3477_v24 = vld [vmem:[%s4943_s15 + $0x170] ss:$8 sps:$4 sm:$0xff]   ;;  %v3485_v31 = vld [vmem:[%s4943_s15 + $0x164] ss:$8 sps:$4 sm:$0xff]  }
 0x2bc   :  { %v892_v34 = vmul.f32 0.02, %v888_v32  ;;  %v3483_v33 = vld [vmem:[%s4943_s15 + $0x160] ss:$8 sps:$4 sm:$0xff]  }
 0x2be   :  { %v894_v36 = vmax.f32 %v888_v32, %v892_v34  ;;  %v3480_v32 = vld [vmem:[%s4943_s15 + $0x60] ss:$8 sps:$4 sm:$0xff]   ;;  %v3488_v34 = vld [vmem:[%s4943_s15 + $0x54] ss:$8 sps:$4 sm:$0xff]  }
 0x2c0   :  { %v895_v37 = vpack.c.bf16 %v894_v36, %v893_v35  ;;  %v3491_v35 = vld [vmem:[%s4943_s15 + $0x154] ss:$8 sps:$4 sm:$0xff]   ;;  %v3486_v36 = vld [vmem:[%s4943_s15 + $0x50] ss:$8 sps:$4 sm:$0xff]  }
 0x2c2   :  { %3262 = vmatmul.mubr.bf16.vlgmr.msra.gmra.mxu0 %v895_v37  ;;  %v3489_v37 = vld [vmem:[%s4943_s15 + $0x150] ss:$8 sps:$4 sm:$0xff]  }
 0x2c3   :  { %3297 = vmatprep.mubr.msk.bf16.mxu0 %vm3619_vm0, %v3618_v21  ;;  %3290 = vmatpush3.bf16.msra.mxu0 %v3470_v57  ;;  %v3519_v57 = vld [vmem:[%s4943_s15 + $0x100] ss:$8 sps:$4 sm:$0xff]  }
 0x2c4   :  { %3291 = vmatprep.subr.bf16.mxu0 %v3618_v21 }
 0x2c7   :  { %3292 = vmatpush3.bf16.msra.mxu0 %v3471_v6  ;;  %v3620_v6 = vmov 1983009808  }
 0x2c8   :  { %3293 = vmatprep.subr.bf16.mxu0 %v3618_v21 }
 0x2cb   :  { %3294 = vmatpush3.bf16.msra.mxu0 %v3472_v7  ;;  %v1277_v7 = vunpack.c.l.s4 %v3620_v6  ;;  %v3579_v6 = vld [vmem:[%s4945_s17 + $0x58] sm:$0xff]  }
 0x2cc   :  { %3295 = vmatprep.subr.bf16.mxu0 %v3618_v21 }
 0x2cf   :  { %3296 = vmatpush3.bf16.msra.mxu0 %v3473_v8  ;;  %v3542_v8 = vld [vmem:[%s4943_s15 + $0xc4] ss:$8 sps:$4 sm:$0xff]  }
 0x2d0   :  { %1791 = vmatprep.subr.bf16.mxu0 %v3479_v28  ;;  %v3555_v28 = vld [vmem:[%s4943_s15 + $0x1a0] ss:$8 sps:$4 sm:$0xff]  }
 0x382   :  { %v1001_v42 = vpop.f32.mrf.mxu0 }
 0x383   :  { %v1002_v43 = vadd.f32 %v2882_v41, %v1001_v42  ;;  %v3500_v42 = vld [vmem:[%s4943_s15 + $0x34] ss:$8 sps:$4 sm:$0xff]  }
 0x384   :  { %v3263_v44 = vpop.f32.mrf.mxu0 }
 0x385   :  { %v1008_v46 = vmul.f32 0.02, %v1002_v43  ;;  %v3498_v44 = vld [vmem:[%s4943_s15 + $0x30] ss:$8 sps:$4 sm:$0xff]  }
 0x386   :  { %v1004_v45 = vpop.f32.mrf.mxu0 }
 0x387   :  { %v1005_v47 = vadd.f32 %v2882_v41, %v1004_v45  ;;  %v1010_v50 = vmax.f32 %v1002_v43, %v1008_v46  ;;  %v3495_v41 = vld [vmem:[%s4943_s15 + $0x140] ss:$8 sps:$4 sm:$0xff]   ;;  %v3503_v43 = vld [vmem:[%s4943_s15 + $0x134] ss:$8 sps:$4 sm:$0xff]   ;;  %v3501_v45 = vld [vmem:[%s4943_s15 + $0x130] ss:$8 sps:$4 sm:$0xff]  }
 0x388   :  { %v3264_v48 = vpop.f32.mrf.mxu0  ;;  %v3506_v46 = vld [vmem:[%s4943_s15 + $0x24] ss:$8 sps:$4 sm:$0xff]  }
 0x389   :  { %v1009_v49 = vmul.f32 0.02, %v1005_v47  ;;  %v3504_v48 = vld [vmem:[%s4943_s15 + $0x20] ss:$8 sps:$4 sm:$0xff]  }
 0x38b   :  { %v1011_v51 = vmax.f32 %v1005_v47, %v1009_v49  ;;  %v3509_v47 = vld [vmem:[%s4943_s15 + $0x124] ss:$8 sps:$4 sm:$0xff]   ;;  %v3507_v49 = vld [vmem:[%s4943_s15 + $0x120] ss:$8 sps:$4 sm:$0xff]  }
 0x38d   :  { %v1012_v53 = vpack.c.bf16 %v1011_v51, %v1010_v50  ;;  %v3512_v50 = vld [vmem:[%s4943_s15 + $0x14] ss:$8 sps:$4 sm:$0xff]  }
 0x38e   :  { %v3515_v51 = vld [vmem:[%s4943_s15 + $0x114] ss:$8 sps:$4 sm:$0xff]  }
 0x38f   :  { %3274 = vmatmul.mubr.msk.bf16.vlgmr.msra.gmra.mxu1 %vm1052_vm1, %v1012_v53  ;;  %v3513_v53 = vld [vmem:[%s4943_s15 + $0x110] ss:$8 sps:$4 sm:$0xff]  }
 0x390   :  { %3278 = vmatpush3.bf16.msra.mxu1 %v3466_v52  ;;  %3285 = vmatprep.mubr.msk.bf16.mxu1 %vm3619_vm0, %v3618_v21  ;;  %v3510_v52 = vld [vmem:[%s4943_s15 + $0x10] ss:$8 sps:$4 sm:$0xff]  }
 0x391   :  { %3279 = vmatprep.subr.bf16.mxu1 %v3618_v21 }
 0x394   :  { %3280 = vmatpush3.bf16.msra.mxu1 %v3467_v54  ;;  %v3518_v54 = vld [vmem:[%s4943_s15 + $0x4] ss:$8 sps:$4 sm:$0xff]  }
 0x395   :  { %3281 = vmatprep.subr.bf16.mxu1 %v3618_v21 }
 0x398   :  { %3282 = vmatpush3.bf16.msra.mxu1 %v3468_v55  ;;  %v3521_v55 = vld [vmem:[%s4943_s15 + $0x104] ss:$8 sps:$4 sm:$0xff]  }
 0x399   :  { %3283 = vmatprep.subr.bf16.mxu1 %v3618_v21 }
 0x39c   :  { %3284 = vmatpush3.bf16.msra.mxu1 %v3469_v56  ;;  %v3516_v56 = vld [vmem:[%s4943_s15] ss:$8 sps:$4 sm:$0xff]  }
 0x39d   :  { %1752 = vmatprep.subr.bf16.mxu1 %v3476_v23 }
 0x44f   :  { %v1090_v59 = vpop.f32.mrf.mxu1 }
 0x450   :  { %v1091_v60 = vadd.f32 %v2891_v58, %v1090_v59  ;;  %v3527_v59 = vld [vmem:[%s4943_s15 + $0x1f4] ss:$8 sps:$4 sm:$0xff]  }
 0x451   :  { %v3275_v61 = vpop.f32.mrf.mxu1 }
 0x452   :  { %v1097_v63 = vmul.f32 0.02, %v1091_v60  ;;  %v3525_v61 = vld [vmem:[%s4943_s15 + $0x1f0] ss:$8 sps:$4 sm:$0xff]  }
 0x453   :  { %v1093_v62 = vpop.f32.mrf.mxu1 }
 0x454   :  { %v1094_v0 = vadd.f32 %v2891_v58, %v1093_v62  ;;  %v1099_v3 = vmax.f32 %v1091_v60, %v1097_v63  ;;  %v3524_v58 = vld [vmem:[%s4943_s15 + $0xf4] ss:$8 sps:$4 sm:$0xff]   ;;  %v3522_v60 = vld [vmem:[%s4943_s15 + $0xf0] ss:$8 sps:$4 sm:$0xff]   ;;  %v3530_v62 = vld [vmem:[%s4943_s15 + $0xe4] ss:$8 sps:$4 sm:$0xff]  }
 0x455   :  { %v3276_v1 = vpop.f32.mrf.mxu1  ;;  %v3533_v63 = vld [vmem:[%s4943_s15 + $0x1e4] ss:$8 sps:$4 sm:$0xff]  }
 0x456   :  { %v1098_v2 = vmul.f32 0.02, %v1094_v0  ;;  %v3531_v1 = vld [vmem:[%s4943_s15 + $0x1e0] ss:$8 sps:$4 sm:$0xff]  }
 0x458   :  { %v1100_v4 = vmax.f32 %v1094_v0, %v1098_v2  ;;  %v3528_v0 = vld [vmem:[%s4943_s15 + $0xe0] ss:$8 sps:$4 sm:$0xff]   ;;  %v3536_v2 = vld [vmem:[%s4943_s15 + $0xd4] ss:$8 sps:$4 sm:$0xff]  }
 0x45a   :  { %v1101_v5 = vpack.c.bf16 %v1100_v4, %v1099_v3  ;;  %v3539_v3 = vld [vmem:[%s4943_s15 + $0x1d4] ss:$8 sps:$4 sm:$0xff]   ;;  %v3534_v4 = vld [vmem:[%s4943_s15 + $0xd0] ss:$8 sps:$4 sm:$0xff]  }
 0x45c   :  { %3286 = vmatmul.mubr.msk.bf16.vlgmr.msra.gmra.mxu1 %vm1052_vm1, %v1101_v5  ;;  %v3537_v5 = vld [vmem:[%s4943_s15 + $0x1d0] ss:$8 sps:$4 sm:$0xff]  }
 0x45d   :  { %1753 = vmatpush1.bf16.msra.mxu1 %v3474_v22  ;;  %v3554_v22 = vld [vmem:[%s4943_s15 + $0xa4] ss:$8 sps:$4 sm:$0xff]  }
 0x45e   :  { %1754 = vmatprep.subr.bf16.mxu1 %v3482_v30  ;;  %v3557_v30 = vld [vmem:[%s4943_s15 + $0x1a4] ss:$8 sps:$4 sm:$0xff]  }
 0x461   :  { %1755 = vmatpush1.bf16.msra.mxu1 %v3480_v32 }
 0x462   :  { %1756 = vmatprep.subr.bf16.mxu1 %v3488_v34 }
 0x465   :  { %1757 = vmatpush1.bf16.msra.mxu1 %v3486_v36  ;;  %v3563_v36 = vld [vmem:[%s4943_s15 + $0x194] ss:$8 sps:$4 sm:$0xff]  }
 0x466   :  { %1758 = vmatprep.subr.bf16.mxu1 %v3494_v38 }
 0x469   :  { %1759 = vmatpush1.bf16.msra.mxu1 %v3492_v40  ;;  %v3561_v40 = vld [vmem:[%s4943_s15 + $0x190] ss:$8 sps:$4 sm:$0xff]  }
 0x46a   :  { %1760 = vmatprep.subr.bf16.mxu1 %v3500_v42 }
 0x46d   :  { %1761 = vmatpush1.bf16.msra.mxu1 %v3498_v44 }
 0x46e   :  { %1762 = vmatprep.subr.bf16.mxu1 %v3506_v46  ;;  %v3564_v46 = vld [vmem:[%s4943_s15 + $0x80] ss:$8 sps:$4 sm:$0xff]  }
 0x471   :  { %1763 = vmatpush1.bf16.msra.mxu1 %v3504_v48 }
 0x472   :  { %1764 = vmatprep.subr.bf16.mxu1 %v3512_v50  ;;  %v3567_v50 = vld [vmem:[%s4943_s15 + $0x180] ss:$8 sps:$4 sm:$0xff]  }
 0x475   :  { %1765 = vmatpush1.bf16.msra.mxu1 %v3510_v52  ;;  %v3571_v52 = vld [vmem:[%s4945_s17 + $0x78] sm:$0xff]  }
 0x476   :  { %1766 = vmatprep.subr.bf16.mxu1 %v3518_v54 }
 0x479   :  { %1767 = vmatpush1.bf16.msra.mxu1 %v3516_v56 }
 0x47a   :  { %1768 = vmatprep.subr.bf16.mxu1 %v3524_v58 }
 0x47d   :  { %1769 = vmatpush2.bf16.msra.mxu1 %v3522_v60 }
 0x47e   :  { %1770 = vmatprep.subr.bf16.mxu1 %v3530_v62  ;;  %v3572_v62 = vld [vmem:[%s4945_s17 + $0x38] sm:$0xff]  }
 0x481   :  { %1771 = vmatpush2.bf16.msra.mxu1 %v3528_v0 }
 0x482   :  { %1772 = vmatprep.subr.bf16.mxu1 %v3536_v2  ;;  %v3575_v2 = vld [vmem:[%s4945_s17 + $0x68] sm:$0xff]  }
 0x485   :  { %1773 = vmatpush2.bf16.msra.mxu1 %v3534_v4  ;;  %v3577_v4 = vld [vmem:[%s4945_s17 + $0x60] sm:$0xff]  }
 0x486   :  { %1774 = vmatprep.subr.bf16.mxu1 %v3542_v8  ;;  %v3581_v8 = vld [vmem:[%s4945_s17 + $0x50] sm:$0xff]  }
 0x51c   :  { %v1178_v10 = vpop.f32.mrf.mxu1 }
 0x51d   :  { %v1179_v11 = vadd.f32 %v2897_v9, %v1178_v10  ;;  %v3543_v10 = vld [vmem:[%s4943_s15 + $0x1c0] ss:$8 sps:$4 sm:$0xff]  }
 0x51e   :  { %v3287_v12 = vpop.f32.mrf.mxu1 }
 0x51f   :  { %v1185_v14 = vmul.f32 0.02, %v1179_v11  ;;  %v1278_v12 = vunpack.c.0.s8 %v1277_v7  ;;  %v3580_v7 = vld [vmem:[%s4945_s17 + $0x18] sm:$0xff]  }
 0x520   :  { %v1181_v13 = vpop.f32.mrf.mxu1 }
 0x521   :  { %v1182_v15 = vadd.f32 %v2897_v9, %v1181_v13  ;;  %v1187_v18 = vmax.f32 %v1179_v11, %v1185_v14  ;;  %v3540_v9 = vld [vmem:[%s4943_s15 + $0xc0] ss:$8 sps:$4 sm:$0xff]   ;;  %v3545_v11 = vld [vmem:[%s4943_s15 + $0x1c4] ss:$8 sps:$4 sm:$0xff]   ;;  %v3548_v14 = vld [vmem:[%s4943_s15 + $0xb4] ss:$8 sps:$4 sm:$0xff]  }
 0x522   :  { %v3288_v16 = vpop.f32.mrf.mxu1  ;;  %1775 = vmatpush2.bf16.msra.mxu1 %v3540_v9  ;;  %v2903_v13 = vld [vmem:[%s4942_s14] ss:$0 sm:$0xff]  ;;  %s3621_s14 = smov 64   ;;  %v3582_v9 = vld [vmem:[%s4945_s17 + $0x10] sm:$0xff]  }
 0x523   :  { %v1186_v17 = vmul.f32 0.02, %v1182_v15  ;;  %v3549_v16 = vld [vmem:[%s4943_s15 + $0x1b0] ss:$8 sps:$4 sm:$0xff]   ;;  %1776 = vmatprep.subr.bf16.mxu1 %v3548_v14 }
 0x524   :  { %v3587_v14 = vld [vmem:[%s4947_s19 + $0x18] sm:$0xff]  }
 0x525   :  { %v1188_v19 = vmax.f32 %v1182_v15, %v1186_v17  ;;  %v3546_v15 = vld [vmem:[%s4943_s15 + $0xb0] ss:$8 sps:$4 sm:$0xff]   ;;  %v3551_v17 = vld [vmem:[%s4943_s15 + $0x1b4] ss:$8 sps:$4 sm:$0xff]  }
 0x526   :  { %1777 = vmatpush2.bf16.msra.mxu1 %v3546_v15  ;;  %v1398_v15 = vld [vmem:[%s4944_s16] sm:$0x3] }
 0x527   :  { %v1189_v20 = vpack.c.bf16 %v1188_v19, %v1187_v18  ;;  %v4318_v18 = vsub.s32 %v1278_v12, %v4025_v26  ;;  %1778 = vmatprep.subr.bf16.mxu1 %v3554_v22  ;;  %v3585_v12 = vld [vmem:[%s4945_s17 + $0x40] sm:$0xff]  }
 0x529   :  { %3298 = vmatmul.mubr.msk.bf16.vlgmr.msra.gmra.mxu0 %vm1052_vm1, %v1189_v20 }
 0x52a   :  { %1792 = vmatpush1.bf16.msra.mxu0 %v3477_v24  ;;  %v3552_v24 = vld [vmem:[%s4943_s15 + $0xa0] ss:$8 sps:$4 sm:$0xff]  }
 0x52b   :  { %1793 = vmatprep.subr.bf16.mxu0 %v3485_v31  ;;  %1779 = vmatpush2.bf16.msra.mxu1 %v3552_v24 }
 0x52e   :  { %1794 = vmatpush1.bf16.msra.mxu0 %v3483_v33  ;;  %v3560_v33 = vld [vmem:[%s4943_s15 + $0x94] ss:$8 sps:$4 sm:$0xff]  }
 0x52f   :  { %1795 = vmatprep.subr.bf16.mxu0 %v3491_v35  ;;  %v3558_v35 = vld [vmem:[%s4943_s15 + $0x90] ss:$8 sps:$4 sm:$0xff]   ;;  %1780 = vmatprep.subr.bf16.mxu1 %v3560_v33 }
 0x530   :  { %1781 = vmatpush2.bf16.msra.mxu1 %v3558_v35  ;;  %v3590_v35 = vld [vmem:[%s4947_s19] sm:$0xff]  }
 0x532   :  { %1796 = vmatpush1.bf16.msra.mxu0 %v3489_v37 }
 0x533   :  { %1797 = vmatprep.subr.bf16.mxu0 %v3497_v39 }
 0x536   :  { %1798 = vmatpush1.bf16.msra.mxu0 %v3495_v41  ;;  %v3566_v41 = vld [vmem:[%s4943_s15 + $0x84] ss:$8 sps:$4 sm:$0xff]  }
 0x537   :  { %1799 = vmatprep.subr.bf16.mxu0 %v3503_v43  ;;  %v3569_v43 = vld [vmem:[%s4943_s15 + $0x184] ss:$8 sps:$4 sm:$0xff]   ;;  %1782 = vmatprep.subr.bf16.mxu1 %v3566_v41 }
 0x538   :  { %1783 = vmatpush2.bf16.msra.mxu1 %v3564_v46 }
 0x539   :  { %3127 = vmatprep.subr.bf16.mxu1 %v3571_v52  ;;  %v2996_v52 = vld [vmem:[%s4950_s22] ss:$0 sm:$0xff] }
 0x53a   :  { %1800 = vmatpush1.bf16.msra.mxu0 %v3501_v45 }
 0x53b   :  { %1801 = vmatprep.subr.bf16.mxu0 %v3509_v47 }
 0x53e   :  { %1802 = vmatpush1.bf16.msra.mxu0 %v3507_v49 }
 0x53f   :  { %1803 = vmatprep.subr.bf16.mxu0 %v3515_v51 }
 0x542   :  { %1804 = vmatpush1.bf16.msra.mxu0 %v3513_v53 }
 0x543   :  { %1805 = vmatprep.subr.bf16.mxu0 %v3521_v55 }
 0x546   :  { %1806 = vmatpush1.bf16.msra.mxu0 %v3519_v57 }
 0x547   :  { %1807 = vmatprep.subr.bf16.mxu0 %v3527_v59 }
 0x54a   :  { %1808 = vmatpush2.bf16.msra.mxu0 %v3525_v61 }
 0x54b   :  { %1809 = vmatprep.subr.bf16.mxu0 %v3533_v63  ;;  %v3573_v63 = vld [vmem:[%s4945_s17 + $0x70] sm:$0xff]  }
 0x54e   :  { %1810 = vmatpush2.bf16.msra.mxu0 %v3531_v1  ;;  %v3574_v1 = vld [vmem:[%s4945_s17 + $0x30] sm:$0xff]  }
 0x54f   :  { %1811 = vmatprep.subr.bf16.mxu0 %v3539_v3  ;;  %v3576_v3 = vld [vmem:[%s4945_s17 + $0x28] sm:$0xff]  }
 0x552   :  { %1812 = vmatpush2.bf16.msra.mxu0 %v3537_v5  ;;  %v3578_v5 = vld [vmem:[%s4945_s17 + $0x20] sm:$0xff]  }
 0x553   :  { %1813 = vmatprep.subr.bf16.mxu0 %v3545_v11  ;;  %v3584_v11 = vld [vmem:[%s4945_s17 + $0x8] sm:$0xff]  }
 0x556   :  { %1814 = vmatpush2.bf16.msra.mxu0 %v3543_v10  ;;  %v3583_v10 = vld [vmem:[%s4945_s17 + $0x48] sm:$0xff]  }
 0x557   :  { %1815 = vmatprep.subr.bf16.mxu0 %v3551_v17  ;;  %v1407_v17 = vrot.slane %v1398_v15, %v158_v29  ;;  %v3589_v29 = vld [vmem:[%s4947_s19 + $0x8] sm:$0xff]  }
 0x55a   :  { %1816 = vmatpush2.bf16.msra.mxu0 %v3549_v16  ;;  %v1403_v16 = vrot.slane %v1398_v15, %v154_v27  ;;  %v3588_v27 = vld [vmem:[%s4947_s19 + $0x10] sm:$0xff]   ;;  %v2420_v15 = vadd.s32 376, %v4025_v26 }
 0x55b   :  { %1817 = vmatprep.subr.bf16.mxu0 %v3557_v30 }
 0x55e   :  { %1818 = vmatpush2.bf16.msra.mxu0 %v3555_v28 }
 0x55f   :  { %1819 = vmatprep.subr.bf16.mxu0 %v3563_v36 }
 0x562   :  { %1820 = vmatpush2.bf16.msra.mxu0 %v3561_v40 }
 0x563   :  { %1821 = vmatprep.subr.bf16.mxu0 %v3569_v43  ;;  %v3591_v43 = vld [vmem:[%s4949_s21] sm:$0xff]  }
 0x566   :  { %1822 = vmatpush2.bf16.msra.mxu0 %v3567_v50  ;;  %v2150_v50 = vld [vmem:[%s4951_s23] sm:$0xf]  ;;  %s3623_s23 = smov [#allocation3]  }
 0x567   :  { %3301 = vmatprep.subr.bf16.mxu0 %v3618_v21 }
 0x5e9   :  { %v1266_v19 = vpop.f32.mrf.mxu0 }
 0x5ea   :  { %v1267_v20 = vadd.f32 %v2903_v13, %v1266_v19 }
 0x5eb   :  { %v3299_v23 = vpop.f32.mrf.mxu0 }
 0x5ec   :  { %v1289_v31 = vcombine.high %v1267_v20, %v1267_v20  ;;  %v1282_v32 = vrot.slane %v1267_v20, %v4318_v18  ;;  %1274 = vst.msk [vmem:[#allocation2] sm:$0x3] %vm4960_vm2, %v1267_v20 }
 0x5ed   :  { %v1269_v34 = vpop.f32.mrf.mxu0 }
 0x5ee   :  { %v1270_v37 = vadd.f32 %v2903_v13, %v1269_v34  ;;  %v1283_v38 = vcombine.high %v1282_v32, %v1282_v32  ;;  %v1296_v39 = vrot.slane %v1289_v31, %v4318_v18  ;;  %v3586_v13 = vld [vmem:[%s4945_s17] sm:$0xff]  }
 0x5ef   :  { %v3300_v42 = vpop.f32.mrf.mxu0 }
 0x5f0   :  { %v1318_v44 = vcombine.high %v1270_v37, %v1270_v37  ;;  %1284 = vrot.lane.b32.xlu0 %v1283_v38, %s3621_s14  ;;  %v1312_v45 = vrot.slane %v1270_v37, %v4318_v18  ;;  %1298 = vst.msk [vmem:[#allocation2 + $0x2] sm:$0x3] %vm4960_vm2, %v1296_v39  ;;  %1304 = vst.msk [vmem:[#allocation2 + $0x4] sm:$0x3] %vm4960_vm2, %v1270_v37  ;;  %v1299_v47 = vcombine.high %v1296_v39, %v1296_v39  ;;  %v2973_v37 = vld [vmem:[%s4946_s18] ss:$0 sm:$0xff] }
 0x5f2   :  { %v1313_v48 = vcombine.high %v1312_v45, %v1312_v45  ;;  %v1325_v49 = vrot.slane %v1318_v44, %v4318_v18  ;;  %v2990_v44 = vld [vmem:[%s4948_s20] ss:$0 sm:$0xff] }
 0x5f4   :  { %1300 = vrot.lane.b32.xlu0 %v1299_v47, %s3621_s14  ;;  %1314 = vrot.lane.b32.xlu1 %v1313_v48, %s3621_s14  ;;  %1327 = vst.msk [vmem:[#allocation2 + $0x6] sm:$0x3] %vm4960_vm2, %v1325_v49  ;;  %v1328_v51 = vcombine.high %v1325_v49, %v1325_v49 }
 0x5f8   :  { %1329 = vrot.lane.b32.xlu1 %v1328_v51, %s3621_s14  ;;  %v2164_v51 = vsel %vm2162_vm5, %v2150_v50, 0 }
 0x662   :  { %v1285_v53 = vpop.permute.xlu0 %1284 }
 0x663   :  { %1288 = vst.msk [vmem:[#allocation2] sm:$0x3] %vm1287_vm3, %v1285_v53 }
 0x666   :  { %v1301_v54 = vpop.permute.xlu0 %1300  ;;  %v1315_v55 = vpop.permute.xlu1 %1314 }
 0x667   :  { %1303 = vst.msk [vmem:[#allocation2 + $0x2] sm:$0x3] %vm1287_vm3, %v1301_v54  ;;  %1317 = vst.msk [vmem:[#allocation2 + $0x4] sm:$0x3] %vm1287_vm3, %v1315_v55 }
 0x66a   :  { %v1330_v56 = vpop.permute.xlu1 %1329 }
 0x66b   :  { %1332 = vst.msk [vmem:[#allocation2 + $0x6] sm:$0x3] %vm1287_vm3, %v1330_v56 }
 0x672   :  { %v1333_v57 = vld [vmem:[#allocation2] sm:$0xff] }
 0x673   :  { %v4369_v58 = vrot.slane %v1333_v57, %v4318_v18  ;;  %v1411_v59 = vcombine.high %v1333_v57, %v1333_v57 }
 0x675   :  { %v4373_v60 = vcombine.high %v4369_v58, %v4369_v58  ;;  %v4376_v61 = vrot.slane %v1411_v59, %v4318_v18  ;;  %v4481_v59 = vand.u32 127, %v152_v25  ;;  %v2404_v25 = vadd.s32 248, %v4025_v26 }
 0x677   :  { %1784 = vmatprep.mubr.f32.mxu1 %v4373_v60  ;;  %v4387_v0 = vcombine.high %v4376_v61, %v4376_v61 }
 0x678   :  { %1785 = vmatmul.mubr.f32.vlgmr.msra.gmra.mxu1 %v4369_v58 }
 0x679   :  { %1823 = vmatprep.mubr.f32.mxu0 %v4387_v0  ;;  %3128 = vmatpush3.bf16.msra.mxu1 %v3572_v62  ;;  %v2214_v62 = vadd.s32 128, %v4481_v59 }
 0x67a   :  { %1824 = vmatmul.mubr.f32.vlgmr.msra.gmra.mxu0 %v4376_v61  ;;  %3129 = vmatprep.subr.bf16.mxu1 %v3573_v63  ;;  %v2216_v63 = vadd.s32 384, %v4481_v59 }
 0x67b   :  { %3309 = vmatprep.mubr.msk.f32.mxu0 %vm3619_vm0, %v3618_v21  ;;  %3302 = vmatpush3.bf16.msra.mxu0 %v3587_v14  ;;  %v2388_v14 = vadd.s32 120, %v4025_v26 }
 0x67c   :  { %3303 = vmatprep.subr.bf16.mxu0 %v3618_v21 }
 0x67d   :  { %3130 = vmatpush3.bf16.msra.mxu1 %v3574_v1  ;;  %v2217_v1 = vshra.s32 %v4481_v59, 6 }
 0x67e   :  { %3131 = vmatprep.subr.bf16.mxu1 %v3575_v2  ;;  %v2215_v2 = vadd.s32 256, %v4481_v59 }
 0x67f   :  { %3304 = vmatpush3.bf16.msra.mxu0 %v3588_v27  ;;  %vm2221_vm7 = vcmp.eq.s32.totalorder %v2217_v1, %v4025_v26  ;;  %v2401_v27 = vadd.s32 224, %v4025_v26  ;;  %v2399_v1 = vadd.s32 208, %v4025_v26 }
 0x680   :  { %3305 = vmatprep.subr.bf16.mxu0 %v3618_v21 }
 0x681   :  { %3132 = vmatpush3.bf16.msra.mxu1 %v3576_v3  ;;  %v2218_v3 = vshra.s32 %v2214_v62, 6  ;;  %v2465_v50 = vand.u32 63, %v2401_v27 }
 0x682   :  { %3133 = vmatprep.subr.bf16.mxu1 %v3577_v4  ;;  %v2220_v4 = vshra.s32 %v2216_v63, 6 }
 0x683   :  { %3306 = vmatpush3.bf16.msra.mxu0 %v3589_v29  ;;  %vm2222_vm8 = vcmp.eq.s32.totalorder %v2218_v3, %v4025_v26  ;;  %v2433_v29 = vadd.s32 480, %v4025_v26  ;;  %v2437_v3 = vand.u32 63, %v4025_v26 }
 0x684   :  { %3307 = vmatprep.subr.bf16.mxu0 %v3618_v21  ;;  %vm2224_vm9 = vcmp.eq.s32.totalorder %v2220_v4, %v4025_v26 }
 0x685   :  { %3134 = vmatpush3.bf16.msra.mxu1 %v3578_v5  ;;  %v2219_v5 = vshra.s32 %v2215_v2, 6  ;;  %v2421_v2 = vadd.s32 384, %v4025_v26 }
 0x686   :  { %3135 = vmatprep.subr.bf16.mxu1 %v3579_v6  ;;  %v2436_v6 = vadd.s32 504, %v4025_v26 }
 0x687   :  { %3308 = vmatpush3.bf16.msra.mxu0 %v3590_v35  ;;  %vm2223_vm10 = vcmp.eq.s32.totalorder %v2219_v5, %v4025_v26 }
 0x688   :  { %3312 = vmatprep.subr.bf16.mxu0 %v3618_v21 }
 0x689   :  { %3136 = vmatpush3.bf16.msra.mxu1 %v3580_v7  ;;  %v2468_v7 = vand.u32 63, %v2404_v25  ;;  %v2485_v25 = vand.u32 63, %v2421_v2 }
 0x68a   :  { %3137 = vmatprep.subr.bf16.mxu1 %v3581_v8  ;;  %v2500_v8 = vand.u32 63, %v2436_v6 }
 0x68b   :  { %vm2532_vm11 = vcmp.eq.s32.totalorder %v2468_v7, %v4481_v59 }
 0x68c   :  { %vm2564_vm12 = vcmp.eq.s32.totalorder %v2500_v8, %v4481_v59  ;;  %v2431_v8 = vadd.s32 464, %v4025_v26 }
 0x68d   :  { %3138 = vmatpush3.bf16.msra.mxu1 %v3582_v9  ;;  %v2999_v9 = vld [vmem:[%s4952_s24] ss:$0 sm:$0xff]  ;;  %s2780_s24 = sshll.u32 %s3623_s23, 4  ;;  %s2781_s24 = int_to_ptr.vmem [resolvable:$true] %s2780_s24 }
 0x68e   :  { %3139 = vmatprep.subr.bf16.mxu1 %v3583_v10  ;;  %s3596_s3 = scalar_lea.vmem %s2781_s24, 32  ;;  %p3601_p1 = scmp.lt.s32.totalorder %s2781_s24, %s2781_s24 }
 0x68f   :  { %p3597_p0 = scmp.ne.s32.totalorder %s2781_s24, %s3596_s3  ;;  %p3602_p2 = scmp.lt.s32.totalorder %s3596_s3, %s3596_s3 }
 0x691   :  { %3140 = vmatpush3.bf16.msra.mxu1 %v3584_v11  ;;  %p3603_p3 = por %p3602_p2, %p3601_p1 }
 0x692   :  { %3141 = vmatprep.subr.bf16.mxu1 %v3585_v12 }
 0x693   :  { %p3604_p4 = pnand %p3603_p3, %p3597_p0 }
 0x695   :  { %3142 = vmatpush3.bf16.msra.mxu1 %v3586_v13 }
 0x696   :  { %3317 = vmatprep.subr.bf16.mxu1 %v3618_v21 }
 0x738   :  { %v1786_v18 = vpop.f32.mrf.mxu1 }
 0x739   :  { %v1787_v19 = vadd.f32 %v1786_v18, %v1403_v16  ;;  %v2435_v18 = vadd.s32 496, %v4025_v26 }
 0x73a   :  { %v1788_v20 = vpop.f32.mrf.mxu1  ;;  %v1825_v22 = vpop.f32.mrf.mxu0 }
 0x73b   :  { %v1789_v23 = vadd.f32 %v1788_v20, %v1407_v17  ;;  %v1826_v24 = vadd.f32 %v1825_v22, %v1787_v19  ;;  %v2403_v17 = vadd.s32 240, %v4025_v26  ;;  %v2387_v20 = vadd.s32 112, %v4025_v26 }
 0x73c   :  { %v1827_v28 = vpop.f32.mrf.mxu0  ;;  %v2419_v22 = vadd.s32 368, %v4025_v26 }
 0x73d   :  { %v1828_v30 = vadd.f32 %v1827_v28, %v1789_v23  ;;  %v1830_v31 = vmul.f32 0.02, %v1826_v24  ;;  %v2452_v23 = vand.u32 63, %v2388_v14  ;;  %v2434_v28 = vadd.s32 488, %v4025_v26 }
 0x73e   :  { %v2451_v35 = vand.u32 63, %v2387_v20  ;;  %v2463_v14 = vand.u32 63, %v2399_v1  ;;  %v2414_v20 = vadd.s32 328, %v4025_v26  ;;  %v2427_v1 = vadd.s32 432, %v4025_v26 }
 0x73f   :  { %v1831_v32 = vmul.f32 0.02, %v1828_v30  ;;  %v1832_v34 = vmax.f32 %v1826_v24, %v1830_v31  ;;  %v2402_v24 = vadd.s32 232, %v4025_v26  ;;  %v2386_v31 = vadd.s32 104, %v4025_v26 }
 0x740   :  { %vm4520_vm13 = vcmp.eq.s32.totalorder %v2452_v23, %v4481_v59  ;;  %v5016_v23 = vmov 0 }
 0x741   :  { %v1833_v33 = vmax.f32 %v1828_v30, %v1831_v32  ;;  %v2484_v30 = vand.u32 63, %v2420_v15  ;;  %v2418_v32 = vadd.s32 360, %v4025_v26  ;;  %v2398_v15 = vadd.s32 200, %v4025_v26 }
 0x743   :  { %2001 = vmatprep.mubr.f32.mxu1 %v1833_v33  ;;  %v2467_v33 = vand.u32 63, %v2403_v17  ;;  %vm4525_vm14 = vcmp.eq.s32.totalorder %v2484_v30, %v4481_v59  ;;  %v5012_v17 = vmov 0  ;;  %v2429_v30 = vadd.s32 448, %v4025_v26 }
 0x744   :  { %2002 = vmatmul.mubr.f32.vlgmr.msra.gmra.mxu1 %v1832_v34  ;;  %v2499_v34 = vand.u32 63, %v2435_v18 }
 0x745   :  { %3319 = vmatprep.mubr.msk.f32.mxu1 %vm3619_vm0, %v3618_v21  ;;  %3318 = vmatpush3.bf16.msra.mxu1 %v2164_v51  ;;  %vm4532_vm15 = vcmp.eq.s32.totalorder %v2467_v33, %v4481_v59  ;;  %v2497_v51 = vand.u32 63, %v2433_v29  ;;  %v2381_v33 = vadd.s32 64, %v4025_v26  ;;  %v2462_v29 = vand.u32 63, %v2398_v15 }
 0x746   :  { %v2393_v15 = vadd.s32 160, %v4025_v26 }
 0x804   :  { %v3143_v36 = vpop.f32.mrf.mxu1 }
 0x806   :  { %v3144_v38 = vpop.f32.mrf.mxu1 }
 0x807   :  { %v3145_v39 = vadd.f32 %v3144_v38, %v3143_v36  ;;  %v2483_v36 = vand.u32 63, %v2419_v22  ;;  %v2417_v38 = vadd.s32 352, %v4025_v26 }
 0x809   :  { %v2004_v40 = vadd.f32 %v3145_v39, %v2973_v37  ;;  %v2385_v37 = vadd.s32 96, %v4025_v26  ;;  %v2466_v39 = vand.u32 63, %v2402_v24  ;;  %vm4548_vm3 = vcmp.eq.s32.totalorder %v2483_v36, %v4481_v59 }
 0x80a   :  { %v2495_v24 = vand.u32 63, %v2431_v8  ;;  %v2396_v36 = vadd.s32 184, %v4025_v26  ;;  %v2426_v8 = vadd.s32 424, %v4025_v26 }
 0x80b   :  { %v2007_v41 = vmul.f32 0.02, %v2004_v40 }
 0x80d   :  { %v2008_v42 = vmax.f32 %v2004_v40, %v2007_v41  ;;  %v2498_v40 = vand.u32 63, %v2434_v28  ;;  %v2400_v41 = vadd.s32 216, %v4025_v26  ;;  %v2397_v28 = vadd.s32 192, %v4025_v26 }
 0x80f   :  { %3310 = vmatmul.mubr.msk.f32.vlgmr.msra.gmra.mxu0 %vm1052_vm1, %v2008_v42  ;;  %vm4543_vm1 = vcmp.eq.s32.totalorder %v2451_v35, %v4481_v59  ;;  %vm4558_vm5 = vcmp.eq.s32.totalorder %v2498_v40, %v4481_v59  ;;  %v2464_v63 = vand.u32 63, %v2400_v41  ;;  %v2380_v40 = vadd.s32 56, %v4025_v26 }
 0x810   :  { %3314 = vmatprep.mubr.msk.f32.mxu0 %vm3619_vm0, %v3618_v21  ;;  %3313 = vmatpush3.bf16.msra.mxu0 %v3591_v43  ;;  %vm4537_vm0 = vcmp.eq.s32.totalorder %v2499_v34, %v4481_v59  ;;  %v2413_v34 = vadd.s32 320, %v4025_v26  ;;  %v2461_v42 = vand.u32 63, %v2397_v28  ;;  %v2493_v43 = vand.u32 63, %v2429_v30 }
 0x811   :  { %vm4597_vm2 = vcmp.eq.s32.totalorder %v2464_v63, %v4481_v59  ;;  %v2424_v28 = vadd.s32 408, %v4025_v26 }
 0x813   :  { %v2488_v41 = vand.u32 63, %v2424_v28 }
 0x8cf   :  { %v2085_v45 = vpop.f32.mrf.mxu0 }
 0x8d0   :  { %v2086_v46 = vadd.f32 %v2990_v44, %v2085_v45  ;;  %v2450_v44 = vand.u32 63, %v2386_v31  ;;  %v2482_v45 = vand.u32 63, %v2418_v32 }
 0x8d1   :  { %v3311_v47 = vpop.f32.mrf.mxu0 }
 0x8d2   :  { %v2089_v48 = vmul.f32 0.02, %v2086_v46  ;;  %v2384_v47 = vadd.s32 88, %v4025_v26 }
 0x8d4   :  { %v2090_v49 = vmax.f32 %v2086_v46, %v2089_v48  ;;  %v2432_v46 = vadd.s32 472, %v4025_v26  ;;  %v2448_v5 = vand.u32 63, %v2384_v47  ;;  %v2445_v47 = vand.u32 63, %v2381_v33 }
 0x8d5   :  { %v2477_v48 = vand.u32 63, %v2413_v34  ;;  %v2408_v33 = vadd.s32 280, %v4025_v26 }
 0x8d6   :  { %3315 = vmatmul.mubr.msk.f32.vlgmr.msra.gmra.mxu0 %vm2106_vm4, %v2090_v49  ;;  %vm4553_vm4 = vcmp.eq.s32.totalorder %v2466_v39, %v4481_v59  ;;  %v2496_v4 = vand.u32 63, %v2432_v46  ;;  %v2428_v39 = vadd.s32 440, %v4025_v26  ;;  %v2375_v46 = vadd.s32 16, %v4025_v26 }
 0x8d7   :  { %2296 = vmatprep.mubr.f32.mxu0 %v3618_v21 }
 0x996   :  { %v2144_v53 = vpop.f32.mrf.mxu0 }
 0x997   :  { %v2145_v54 = vadd.f32 %v2996_v52, %v2144_v53  ;;  %v2416_v52 = vadd.s32 344, %v4025_v26 }
 0x998   :  { %v3316_v55 = vpop.f32.mrf.mxu0 }
 0x999   :  { %v2148_v56 = vmul.f32 0.02, %v2145_v54  ;;  %v2449_v55 = vand.u32 63, %v2385_v37  ;;  %v2480_v7 = vand.u32 63, %v2416_v52  ;;  %v2395_v52 = vadd.s32 176, %v4025_v26 }
 0x99b   :  { %v2149_v57 = vmax.f32 %v2145_v54, %v2148_v56  ;;  %v2481_v56 = vand.u32 63, %v2417_v38  ;;  %v2478_v38 = vand.u32 63, %v2414_v20  ;;  %v2459_v6 = vand.u32 63, %v2395_v52 }
 0x99c   :  { %v2409_v20 = vadd.s32 288, %v4025_v26  ;;  %v2439_v52 = vand.u32 63, %v2375_v46  ;;  %v2374_v54 = vadd.s32 8, %v4025_v26 }
 0x99d   :  { %3320 = vmatmul.mubr.msk.f32.vlgmr.msra.gmra.mxu1 %vm4961_vm6, %v2149_v57  ;;  %vm4604_vm6 = vcmp.eq.s32.totalorder %v2496_v4, %v4481_v59  ;;  %v2379_v4 = vadd.s32 48, %v4025_v26 }
 0x99e   :  { %2367 = vmatprep.mubr.f32.mxu1 %v3618_v21  ;;  %v3622_v21 = vmov 1.0   ;;  %v5013_v17 = vsel %vm4604_vm6, 4294967295, %v5012_v17  ;;  %vm5018_vm6 = vcmask 64512   ;;  %v2438_v62 = vand.u32 63, %v2374_v54 }
 0x99f   :  { %3002 = vmatprep.subr.msk.mxu0 %vm2222_vm8, %v3622_v21  ;;  %3005 = vmatprep.subr.msk.mxu1 %vm2224_vm9, %v3622_v21  ;;  %vm4569_vm8 = vcmp.eq.s32.totalorder %v2482_v45, %v4481_v59  ;;  %vm4574_vm9 = vcmp.eq.s32.totalorder %v2465_v50, %v4481_v59  ;;  %v2423_v45 = vadd.s32 400, %v4025_v26  ;;  %v2390_v50 = vadd.s32 136, %v4025_v26 }
 0x9a0   :  { %3003 = vmatpush1.msk.msra.mxu0 %vm2221_vm7, %v3622_v21  ;;  %3006 = vmatpush1.msk.msra.mxu1 %vm2223_vm10, %v3622_v21  ;;  %vm4564_vm7 = vcmp.eq.s32.totalorder %v2450_v44, %v4481_v59  ;;  %vm4579_vm10 = vcmp.eq.s32.totalorder %v2497_v51, %v4481_v59  ;;  %v2412_v44 = vadd.s32 312, %v4025_v26  ;;  %v2460_v51 = vand.u32 63, %v2396_v36 }
 0x9a1   :  { %3155 = vmatprep.subr.msk.mxu0 %vm2532_vm11, %v3622_v21  ;;  %3190 = vmatprep.subr.msk.mxu1 %vm2564_vm12, %v3622_v21  ;;  %vm4585_vm11 = vcmp.eq.s32.totalorder %v2449_v55, %v4481_v59  ;;  %vm4590_vm12 = vcmp.eq.s32.totalorder %v2481_v56, %v4481_v59  ;;  %v2492_v55 = vand.u32 63, %v2428_v39  ;;  %v2444_v56 = vand.u32 63, %v2380_v40 }
 0x9a2   :  { %v2476_v63 = vand.u32 63, %v2412_v44  ;;  %v2473_v39 = vand.u32 63, %v2409_v20  ;;  %v2391_v44 = vadd.s32 144, %v4025_v26  ;;  %v2487_v49 = vand.u32 63, %v2423_v45 }
 0xa5d   :  { %v2200_v10 = vpop.f32.mrf.mxu1 }
 0xa5e   :  { %v2201_v11 = vadd.f32 %v2999_v9, %v2200_v10  ;;  %v5006_v9 = vmov 0  ;;  %v5008_v10 = vmov 0 }
 0xa5f   :  { %v3321_v12 = vpop.f32.mrf.mxu1  ;;  %v5007_v9 = vsel %vm4585_vm11, 4294967295, %v5006_v9  ;;  %v5009_v10 = vsel %vm4590_vm12, 4294967295, %v5008_v10  ;;  %vm4609_vm12 = vcmp.eq.s32.totalorder %v2448_v5, %v4481_v59  ;;  %vm5019_vm11 = vmmov %vm5018_vm6  ;;  %v2411_v5 = vadd.s32 304, %v4025_v26 }
 0xa60   :  { %v3001_v13 = vmul.f32 -1.442695, %v2201_v11  ;;  %v2383_v11 = vadd.s32 80, %v4025_v26  ;;  %v2415_v12 = vadd.s32 336, %v4025_v26 }
 0xa61   :  { %v2475_v18 = vand.u32 63, %v2411_v5 }
 0xa62   :  { %3592 = vpow2.f32 %v3001_v13  ;;  %v5010_v13 = vmov 0  ;;  %v2447_v31 = vand.u32 63, %v2383_v11  ;;  %v2479_v32 = vand.u32 63, %v2415_v12 }
 0xa63   :  { %v5011_v13 = vsel %vm4597_vm2, 4294967295, %v5010_v13  ;;  %vm4616_vm2 = vcmp.eq.s32.totalorder %v2480_v7, %v4481_v59  ;;  %v2394_v7 = vadd.s32 168, %v4025_v26  ;;  %v2378_v11 = vadd.s32 40, %v4025_v26 }
 0xa64   :  { %v5017_v23 = vsel %vm4616_vm2, 4294967295, %v5016_v23  ;;  %vm4633_vm2 = vcmp.eq.s32.totalorder %v2463_v14, %v4481_v59  ;;  %v2410_v12 = vadd.s32 296, %v4025_v26  ;;  %v2491_v14 = vand.u32 63, %v2427_v1 }
 0xa65   :  { %v2442_v30 = vand.u32 63, %v2378_v11  ;;  %v2389_v1 = vadd.s32 128, %v4025_v26 }
 0xa67   :  { %v2453_v5 = vand.u32 63, %v2389_v1 }
 0xa6f   :  { %v3593_v16 = vpop.eup %3592 }
 0xa70   :  { %v2207_v19 = vadd.f32 1.0, %v3593_v16  ;;  %v2430_v16 = vadd.s32 456, %v4025_v26 }
 0xa72   :  { %3594 = vrcp.f32 %v2207_v19  ;;  %v2382_v19 = vadd.s32 72, %v4025_v26  ;;  %v2494_v35 = vand.u32 63, %v2430_v16  ;;  %v2425_v16 = vadd.s32 416, %v4025_v26 }
 0xa74   :  { %v2446_v37 = vand.u32 63, %v2382_v19  ;;  %v2377_v19 = vadd.s32 32, %v4025_v26 }
 0xa7f   :  { %v3595_v22 = vpop.eup %3594 }
 0xa80   :  { %3004 = vmatmul.mubr.msk.f32.vlgmr.msra.gmra.mxu0 %vm5018_vm6, %v3595_v22  ;;  %3007 = vmatmul.mubr.msk.f32.vlgmr.msra.gmra.mxu1 %vm5019_vm11, %v3595_v22  ;;  %vm4653_vm6 = vcmp.eq.s32.totalorder %v2495_v24, %v4481_v59  ;;  %vm4731_vm11 = vcmp.eq.s32.totalorder %v2445_v47, %v4481_v59  ;;  %v2458_v22 = vand.u32 63, %v2394_v7  ;;  %v2392_v24 = vadd.s32 152, %v4025_v26 }
 0xa81   :  { %3156 = vmatpush3.msk.msra.mxu0 %vm4520_vm13, %v3622_v21  ;;  %3191 = vmatpush3.msk.msra.mxu1 %vm4525_vm14, %v3622_v21  ;;  %vm4665_vm13 = vcmp.eq.s32.totalorder %v2447_v31, %v4481_v59  ;;  %vm4670_vm14 = vcmp.eq.s32.totalorder %v2479_v32, %v4481_v59  ;;  %v2474_v31 = vand.u32 63, %v2410_v12  ;;  %v2376_v32 = vadd.s32 24, %v4025_v26 }
 0xa82   :  { %3157 = vmatprep.subr.msk.mxu0 %vm4532_vm15, %v3622_v21  ;;  %3192 = vmatprep.subr.msk.mxu1 %vm4537_vm0, %v3622_v21  ;;  %vm4681_vm15 = vcmp.eq.s32.totalorder %v2462_v29, %v4481_v59  ;;  %vm4686_vm0 = vcmp.eq.s32.totalorder %v2494_v35, %v4481_v59  ;;  %v2457_v29 = vand.u32 63, %v2393_v15  ;;  %v2489_v35 = vand.u32 63, %v2425_v16 }
 0xa83   :  { %3158 = vmatpush3.msk.msra.mxu0 %vm4543_vm1, %v3622_v21  ;;  %3193 = vmatpush3.msk.msra.mxu1 %vm4548_vm3, %v3622_v21  ;;  %vm4698_vm1 = vcmp.eq.s32.totalorder %v2446_v37, %v4481_v59  ;;  %vm4703_vm3 = vcmp.eq.s32.totalorder %v2478_v38, %v4481_v59  ;;  %v2441_v38 = vand.u32 63, %v2377_v19  ;;  %v2456_v40 = vand.u32 63, %v2392_v24 }
 0xa84   :  { %3159 = vmatprep.subr.msk.mxu0 %vm4553_vm4, %v3622_v21  ;;  %3194 = vmatprep.subr.msk.mxu1 %vm4558_vm5, %v3622_v21  ;;  %vm5036_vm4 = vnez %v5007_v9  ;;  %vm5037_vm5 = vnez %v5009_v10  ;;  %v2407_v47 = vadd.s32 272, %v4025_v26 }
 0xa85   :  { %3160 = vmatpush3.msk.msra.mxu0 %vm4564_vm7, %v3622_v21  ;;  %3195 = vmatpush3.msk.msra.mxu1 %vm4569_vm8, %v3622_v21  ;;  %vm4714_vm7 = vcmp.eq.s32.totalorder %v2461_v42, %v4481_v59  ;;  %vm4719_vm8 = vcmp.eq.s32.totalorder %v2493_v43, %v4481_v59  ;;  %v2440_v42 = vand.u32 63, %v2376_v32  ;;  %v2472_v43 = vand.u32 63, %v2408_v33 }
 0xa86   :  { %3161 = vmatprep.subr.msk.mxu0 %vm4574_vm9, %v3622_v21  ;;  %3196 = vmatprep.subr.msk.mxu1 %vm4579_vm10, %v3622_v21  ;;  %vm5042_vm9 = vnez %v5011_v13  ;;  %vm5043_vm10 = vnez %v5013_v17  ;;  %v2443_v17 = vand.u32 63, %v2379_v4  ;;  %v2471_v53 = vand.u32 63, %v2407_v47 }
 0xa87   :  { %3162 = vmatpush3.msk.msra.mxu0 %vm5036_vm4, %v3622_v21  ;;  %3197 = vmatpush3.msk.msra.mxu1 %vm5037_vm5, %v3622_v21  ;;  %vm4736_vm4 = vcmp.eq.s32.totalorder %v2477_v48, %v4481_v59  ;;  %vm5048_vm5 = vnez %v5017_v23  ;;  %v2490_v23 = vand.u32 63, %v2426_v8  ;;  %v2455_v48 = vand.u32 63, %v2391_v44 }
 0xa88   :  { %3163 = vmatprep.subr.msk.mxu0 %vm5042_vm9, %v3622_v21  ;;  %3198 = vmatprep.subr.msk.mxu1 %vm5043_vm10, %v3622_v21  ;;  %vm4749_vm9 = vcmp.eq.s32.totalorder %v2460_v51, %v4481_v59  ;;  %vm4767_vm10 = vcmp.eq.s32.totalorder %v2444_v56, %v4481_v59  ;;  %v2422_v51 = vadd.s32 392, %v4025_v26  ;;  %v2454_v56 = vand.u32 63, %v2390_v50 }
 0xa89   :  { %3164 = vmatpush3.msk.msra.mxu0 %vm4609_vm12, %v3622_v21  ;;  %3199 = vmatpush3.msk.msra.mxu1 %vm5048_vm5, %v3622_v21  ;;  %vm4762_vm12 = vcmp.eq.s32.totalorder %v2492_v55, %v4481_v59  ;;  %vm2537_vm5 = vcmp.eq.s32.totalorder %v2473_v39, %v4481_v59  ;;  %v2406_v55 = vadd.s32 264, %v4025_v26  ;;  %v2405_v4 = vadd.s32 256, %v4025_v26 }
 0xa8a   :  { %3165 = vmatprep.subr.msk.mxu0 %vm4633_vm2, %v3622_v21  ;;  %3200 = vmatprep.subr.msk.mxu1 %vm4653_vm6, %v3622_v21  ;;  %vm4780_vm2 = vcmp.eq.s32.totalorder %v2476_v63, %v4481_v59  ;;  %vm4817_vm6 = vcmp.eq.s32.totalorder %v2459_v6, %v4481_v59  ;;  %v2486_v57 = vand.u32 63, %v2422_v51 }
 0xa8b   :  { %3166 = vmatpush3.msk.msra.mxu0 %vm4665_vm13, %v3622_v21  ;;  %3201 = vmatpush3.msk.msra.mxu1 %vm4670_vm14, %v3622_v21  ;;  %vm4822_vm13 = vcmp.eq.s32.totalorder %v2491_v14, %v4481_v59  ;;  %vm4833_vm14 = vcmp.eq.s32.totalorder %v2443_v17, %v4481_v59  ;;  %v2470_v63 = vand.u32 63, %v2406_v55  ;;  %v2469_v6 = vand.u32 63, %v2405_v4 }
 0xa8c   :  { %3167 = vmatprep.subr.msk.mxu0 %vm4681_vm15, %v3622_v21  ;;  %3202 = vmatprep.subr.msk.mxu1 %vm4686_vm0, %v3622_v21  ;;  %vm4838_vm15 = vcmp.eq.s32.totalorder %v2475_v18, %v4481_v59  ;;  %vm2522_vm0 = vcmp.eq.s32.totalorder %v2458_v22, %v4481_v59 }
 0xa8d   :  { %3168 = vmatpush3.msk.msra.mxu0 %vm4698_vm1, %v3622_v21  ;;  %3203 = vmatpush3.msk.msra.mxu1 %vm4703_vm3, %v3622_v21  ;;  %vm2554_vm1 = vcmp.eq.s32.totalorder %v2490_v23, %v4481_v59  ;;  %vm2506_vm3 = vcmp.eq.s32.totalorder %v2442_v30, %v4481_v59 }
 0xa8e   :  { %3169 = vmatprep.subr.msk.mxu0 %vm4714_vm7, %v3622_v21  ;;  %3204 = vmatprep.subr.msk.mxu1 %vm4719_vm8, %v3622_v21  ;;  %vm2538_vm7 = vcmp.eq.s32.totalorder %v2474_v31, %v4481_v59  ;;  %vm2521_vm8 = vcmp.eq.s32.totalorder %v2457_v29, %v4481_v59 }
 0xa8f   :  { %3170 = vmatpush3.msk.msra.mxu0 %vm4731_vm11, %v3622_v21  ;;  %3205 = vmatpush3.msk.msra.mxu1 %vm4736_vm4, %v3622_v21  ;;  %vm2553_vm11 = vcmp.eq.s32.totalorder %v2489_v35, %v4481_v59  ;;  %vm2505_vm4 = vcmp.eq.s32.totalorder %v2441_v38, %v4481_v59 }
 0xa90   :  { %3171 = vmatprep.subr.msk.mxu0 %vm4749_vm9, %v3622_v21  ;;  %3206 = vmatprep.subr.msk.mxu1 %vm4762_vm12, %v3622_v21  ;;  %vm2520_vm9 = vcmp.eq.s32.totalorder %v2456_v40, %v4481_v59  ;;  %vm2552_vm12 = vcmp.eq.s32.totalorder %v2488_v41, %v4481_v59 }
 0xa91   :  { %3172 = vmatpush3.msk.msra.mxu0 %vm4767_vm10, %v3622_v21  ;;  %3207 = vmatpush3.msk.msra.mxu1 %vm4780_vm2, %v3622_v21  ;;  %vm2504_vm10 = vcmp.eq.s32.totalorder %v2440_v42, %v4481_v59  ;;  %vm2536_vm2 = vcmp.eq.s32.totalorder %v2472_v43, %v4481_v59 }
 0xa92   :  { %3173 = vmatprep.subr.msk.mxu0 %vm4817_vm6, %v3622_v21  ;;  %3208 = vmatprep.subr.msk.mxu1 %vm4822_vm13, %v3622_v21  ;;  %vm2519_vm6 = vcmp.eq.s32.totalorder %v2455_v48, %v4481_v59  ;;  %vm2551_vm13 = vcmp.eq.s32.totalorder %v2487_v49, %v4481_v59 }
 0xa93   :  { %3174 = vmatpush3.msk.msra.mxu0 %vm4833_vm14, %v3622_v21  ;;  %3209 = vmatpush3.msk.msra.mxu1 %vm4838_vm15, %v3622_v21  ;;  %vm2503_vm14 = vcmp.eq.s32.totalorder %v2439_v52, %v4481_v59  ;;  %vm2535_vm15 = vcmp.eq.s32.totalorder %v2471_v53, %v4481_v59 }
 0xa94   :  { %3175 = vmatprep.subr.msk.mxu0 %vm2522_vm0, %v3622_v21  ;;  %3210 = vmatprep.subr.msk.mxu1 %vm2554_vm1, %v3622_v21  ;;  %vm2518_vm0 = vcmp.eq.s32.totalorder %v2454_v56, %v4481_v59  ;;  %vm2550_vm1 = vcmp.eq.s32.totalorder %v2486_v57, %v4481_v59 }
 0xa95   :  { %3176 = vmatpush3.msk.msra.mxu0 %vm2506_vm3, %v3622_v21  ;;  %3211 = vmatpush3.msk.msra.mxu1 %vm2538_vm7, %v3622_v21  ;;  %vm2502_vm3 = vcmp.eq.s32.totalorder %v2438_v62, %v4481_v59  ;;  %vm2534_vm7 = vcmp.eq.s32.totalorder %v2470_v63, %v4481_v59 }
 0xa96   :  { %3177 = vmatprep.subr.msk.mxu0 %vm2521_vm8, %v3622_v21  ;;  %3212 = vmatprep.subr.msk.mxu1 %vm2553_vm11, %v3622_v21  ;;  %vm2501_vm8 = vcmp.eq.s32.totalorder %v2437_v3, %v4481_v59  ;;  %vm2517_vm11 = vcmp.eq.s32.totalorder %v2453_v5, %v4481_v59 }
 0xa97   :  { %3178 = vmatpush3.msk.msra.mxu0 %vm2505_vm4, %v3622_v21  ;;  %3213 = vmatpush3.msk.msra.mxu1 %vm2537_vm5, %v3622_v21  ;;  %vm2549_vm4 = vcmp.eq.s32.totalorder %v2485_v25, %v4481_v59  ;;  %vm2533_vm5 = vcmp.eq.s32.totalorder %v2469_v6, %v4481_v59 }
 0xa98   :  { %3179 = vmatprep.subr.msk.mxu0 %vm2520_vm9, %v3622_v21  ;;  %3214 = vmatprep.subr.msk.mxu1 %vm2552_vm12, %v3622_v21  ;;  %vm5065_vm9 = vcmask 517120  }
 0xa99   :  { %3180 = vmatpush3.msk.msra.mxu0 %vm2504_vm10, %v3622_v21  ;;  %3215 = vmatpush3.msk.msra.mxu1 %vm2536_vm2, %v3622_v21 }
 0xa9a   :  { %3181 = vmatprep.subr.msk.mxu0 %vm2519_vm6, %v3622_v21  ;;  %3216 = vmatprep.subr.msk.mxu1 %vm2551_vm13, %v3622_v21 }
 0xa9b   :  { %3182 = vmatpush3.msk.msra.mxu0 %vm2503_vm14, %v3622_v21  ;;  %3217 = vmatpush3.msk.msra.mxu1 %vm2535_vm15, %v3622_v21 }
 0xa9c   :  { %3183 = vmatprep.subr.msk.mxu0 %vm2518_vm0, %v3622_v21  ;;  %3218 = vmatprep.subr.msk.mxu1 %vm2550_vm1, %v3622_v21 }
 0xa9d   :  { %3184 = vmatpush3.msk.msra.mxu0 %vm2502_vm3, %v3622_v21  ;;  %3219 = vmatpush3.msk.msra.mxu1 %vm2534_vm7, %v3622_v21 }
 0xa9e   :  { %3185 = vmatprep.subr.msk.mxu0 %vm2517_vm11, %v3622_v21  ;;  %3220 = vmatprep.subr.msk.mxu1 %vm2549_vm4, %v3622_v21 }
 0xa9f   :  { %3186 = vmatpush3.msk.msra.mxu0 %vm2501_vm8, %v3622_v21  ;;  %3221 = vmatpush3.msk.msra.mxu1 %vm2533_vm5, %v3622_v21 }
 0xb40   :  { %v2298_v26 = vpop.f32.mrf.mxu0  ;;  %v2369_v7 = vpop.f32.mrf.mxu1 }
 0xb41   :  { %v2629_v12 = vmul.f32 %v2298_v26, %v4369_v58  ;;  %v2631_v13 = vmul.f32 %v2369_v7, %v4376_v61 }
 0xb42   :  { %v2300_v8 = vpop.f32.mrf.mxu0  ;;  %v2371_v9 = vpop.f32.mrf.mxu1 }
 0xb43   :  { %v2630_v10 = vmul.f32 %v2300_v8, %v4373_v60  ;;  %v2632_v11 = vmul.f32 %v2371_v9, %v4387_v0 }
 0xb45   :  { %2697 = vmatprep.mubr.f32.mxu0 %v2630_v10  ;;  %2767 = vmatprep.mubr.f32.mxu1 %v2632_v11 }
 0xb46   :  { %2698 = vmatmul.mubr.f32.vlgmr.msra.gmra.mxu0 %v2629_v12  ;;  %2768 = vmatmul.mubr.f32.vlgmr.msra.gmra.mxu1 %v2631_v13 }
 0xc06   :  { %v3187_v59 = vpop.f32.mrf.mxu0  ;;  %v3222_v14 = vpop.f32.mrf.mxu1 }
 0xc08   :  { %v3188_v15 = vpop.f32.mrf.mxu0  ;;  %v3223_v21 = vpop.f32.mrf.mxu1 }
 0xc09   :  { %v3189_v16 = vadd.f32 %v3188_v15, %v3187_v59  ;;  %v3224_v17 = vadd.f32 %v3223_v21, %v3222_v14 }
 0xc0b   :  { %v2770_v18 = vadd.f32 %v3224_v17, %v3189_v16 }
 0xc0d   :  { %2773 = vst.msk [vmem:[#allocation3] sm:$0x3] %vm5065_vm9, %v2770_v18 }
 0xc0e   :  { %3607 = shalt.err (!%p3604_p4)
}
 0xc0f   :  { %2783 = dma.vmem_to_hbm [thread:$0]  %s2781_s24, 32, %s4953_s25, [#allocation4]  }
 0xc10   :  { %3616 = dma.done.wait [#allocation4], 32  }
 0xc11   :  { %3617 = vsyncadd [#allocation4], 4294967264 }
 0xc12   :  { %2787 = vsyncpa [#allocation4], 1 }

</bundles_post_ra>
